<compile_context>
chip_gen: v5e
topology: v5e:2x2
jax: 0.10.0
libtpu: 0.0.40
codegen_flags: <defaults>
</compile_context>

<pallas_src>
import functools

import jax
import jax.numpy as jnp
import numpy as np
from jax import lax
from jax.experimental import pallas as pl
from jax.experimental.pallas import tpu as pltpu


# ----------------------------- Pallas kernel ------------------------------ #

def _encoder_kernel(p1_ref, w1_ref, w234_ref, b_ref, o_ref,
                    a1_ref, a2_ref, a3_ref, *, B, Ho1, Wo1, Cout):
    """Fused 4-layer conv stack for one block of B images.

    p1_ref:   (1, B*S, 9*Cin) bf16  stride-2 im2col patches of layer 1
    w1_ref:   (9*Cin, Cout)   bf16  layer-1 weight matrix (norm folded in)
    w234_ref: (3, 9, Cout, Cout) bf16  per-tap weights of layers 2..4
    b_ref:    (4, Cout)       f32   biases (layer-1 bias has -0.5 term folded)
    o_ref:    (1, B*S, Cout)  f32   layer-4 output in the padded frame
    a1/a2/a3: (B*S, Cout) bf16 VMEM scratch, padded-frame activations
    """
    f32 = jnp.float32
    bf16 = jnp.bfloat16
    S = Ho1 * Wo1                      # per-image row stride, all layers

    # ---- Layer 1 (stride 2): one dense GEMM over the whole block ----------
    y1 = jnp.dot(p1_ref[0], w1_ref[...], preferred_element_type=f32)
    a1_ref[...] = jnp.maximum(y1 + b_ref[0:1, :], 0.0).astype(bf16)

    # ---- Layers 2..4: 3x3 stride-1 convs in the padded coordinate frame ---
    def conv3x3(src_ref, layer, Hv, Wv):
        # Output for image b at (ho, wo) lives at row b*S + ho*Wo1 + wo.
        # Rows with ho >= Hv or wo >= Wv are junk; they only ever feed junk.
        slab = (B - 1) * S + (Hv - 1) * Wo1 + Wv
        acc = None
        for i in range(3):
            for j in range(3):
                r0 = i * Wo1 + j                       # max 2*Wo1+2 < S
                blk = src_ref[r0:r0 + slab, :]         # bf16 contiguous slab
                d = jnp.dot(blk, w234_ref[layer, i * 3 + j],
                            preferred_element_type=f32)
                acc = d if acc is None else acc + d
        # f32 bias add + ReLU (keep elementwise math out of bf16 for v5e).
        return jnp.maximum(acc + b_ref[layer + 1:layer + 2, :], 0.0)

    H2, W2 = Ho1 - 2, Wo1 - 2
    H3, W3 = H2 - 2, W2 - 2
    H4, W4 = H3 - 2, W3 - 2

    y2 = conv3x3(a1_ref, 0, H2, W2)
    a2_ref[0:y2.shape[0], :] = y2.astype(bf16)         # cast once at store
    y3 = conv3x3(a2_ref, 1, H3, W3)
    a3_ref[0:y3.shape[0], :] = y3.astype(bf16)
    y4 = conv3x3(a3_ref, 2, H4, W4)                     # (.., Cout) f32
    o_ref[0, 0:y4.shape[0], :] = y4                     # lane-dense store
    if y4.shape[0] < B * S:                             # deterministic tail
        o_ref[0, y4.shape[0]:, :] = jnp.zeros((B * S - y4.shape[0], Cout), f32)


def _encoder_pallas(patches, w1_mat, w234, biases, *, B, Ho1, Wo1):
    """patches: (num_steps, B*S, 9*Cin) bf16 -> (num_steps, B*S, Cout) f32."""
    num_steps, M, K1 = patches.shape
    Cout = w1_mat.shape[1]
    S = Ho1 * Wo1
    assert M == B * S

    kernel = functools.partial(_encoder_kernel, B=B, Ho1=Ho1, Wo1=Wo1, Cout=Cout)
    grid_spec = pltpu.PrefetchScalarGridSpec(
        num_scalar_prefetch=0,
        grid=(num_steps,),
        in_specs=[
            pl.BlockSpec((1, B * S, K1), lambda n: (n, 0, 0)),
            # Grid-invariant weights/biases (constant index_maps -> fetched once).
            pl.BlockSpec((K1, Cout), lambda n: (0, 0)),
            pl.BlockSpec((3, 9, Cout, Cout), lambda n: (0, 0, 0, 0)),
            pl.BlockSpec((4, Cout), lambda n: (0, 0)),
        ],
        out_specs=pl.BlockSpec((1, B * S, Cout), lambda n: (n, 0, 0)),
        scratch_shapes=[
            pltpu.VMEM((B * S, Cout), jnp.bfloat16),
            pltpu.VMEM((B * S, Cout), jnp.bfloat16),
            pltpu.VMEM((B * S, Cout), jnp.bfloat16),
        ],
    )
    return pl.pallas_call(
        kernel,
        out_shape=jax.ShapeDtypeStruct((num_steps, B * S, Cout), jnp.float32),
        grid_spec=grid_spec,
        compiler_params=pltpu.CompilerParams(dimension_semantics=("parallel",)),
    )(patches, w1_mat, w234, biases)


# ------------------------------- JAX glue --------------------------------- #

def _choose_grid(n, max_block=128):
    """Pick (num_steps, images_per_step): batch hard, keep >=2 steps (v7x)."""
    if n <= 1:
        return 1, 1
    steps = max(2, -(-n // max_block))
    b = -(-n // steps)
    steps = -(-n // b)
    return steps, b


def prepare_params(params):
    """One-time: PyTorch OIHW params -> kernel-layout matrices.

    Folds the `x/255 - 0.5` input normalization into layer-1 weight & bias:
      w1' = w1/255 ;  b1' = b1 - 0.5 * sum_{cin,kh,kw} w1
    """
    (w1, b1), (w2, b2), (w3, b3), (w4, b4) = params
    cin, cout = w1.shape[1], w1.shape[0]
    w1f = w1.astype(jnp.float32)
    b1_fold = b1.astype(jnp.float32) - 0.5 * jnp.sum(w1f, axis=(1, 2, 3))
    w1_fold = w1f / 255.0
    # OIHW -> (kh, kw, Cin, Cout); tap order matches the in-kernel i*3+j order.
    w1_mat = jnp.transpose(w1_fold, (2, 3, 1, 0)).reshape(9 * cin, cout)
    w1_mat = w1_mat.astype(jnp.bfloat16)
    w234 = jnp.stack(
        [jnp.transpose(w, (2, 3, 1, 0)).reshape(9, cout, cout)
         for w in (w2, w3, w4)], axis=0).astype(jnp.bfloat16)
    biases = jnp.stack([b1_fold, b2, b3, b4], axis=0).astype(jnp.float32)
    return w1_mat, w234, biases


@jax.jit
def encoder_forward(obs_nchw, w1_mat, w234, biases):
    """PyTorch-equivalent forward. obs_nchw: (N, Cin, H, W) float32 in [0,255]."""
    x = jnp.transpose(obs_nchw, (0, 2, 3, 1))          # NHWC, raw values
    N, H, W, Cin = x.shape
    Ho1 = (H - 3) // 2 + 1
    Wo1 = (W - 3) // 2 + 1
    H4, W4 = Ho1 - 6, Wo1 - 6
    assert H4 >= 1 and W4 >= 1, "input too small for the 4-layer stack"
    Cout = w1_mat.shape[1]
    S = Ho1 * Wo1

    # Layer-1 (stride 2) im2col gather — fuses with the transpose/cast above.
    cols = []
    for i in range(3):
        for j in range(3):
            cols.append(x[:, i::2, j::2, :][:, :Ho1, :Wo1, :])
    patches = jnp.concatenate(cols, axis=-1).reshape(N, S, 9 * Cin)
    patches = patches.astype(jnp.bfloat16)              # 0..255 exact in bf16

    num_steps, B = _choose_grid(N)
    Npad = num_steps * B
    if Npad != N:
        patches = jnp.pad(patches, ((0, Npad - N), (0, 0), (0, 0)))
    patches = patches.reshape(num_steps, B * S, 9 * Cin)

    out = _encoder_pallas(patches, w1_mat, w234, biases, B=B, Ho1=Ho1, Wo1=Wo1)

    # Padded-frame output -> valid rows -> channel-major flatten (== PyTorch).
    out = out.reshape(Npad, Ho1, Wo1, Cout)[:N, :H4, :W4, :]
    h = jnp.transpose(out, (0, 3, 1, 2)).reshape(N, Cout * H4 * W4)
    return h


def init_params(key, inchannel):
    """Deterministic synthetic weights (PyTorch layer shapes: OIHW + bias)."""
    shapes = [
        ((32, inchannel, 3, 3), (32,)),
        ((32, 32, 3, 3), (32,)),
        ((32, 32, 3, 3), (32,)),
        ((32, 32, 3, 3), (32,)),
    ]
    params = []
    for ws, bs in shapes:
        key, kw, kb = jax.random.split(key, 3)
        fan_in = ws[1] * ws[2] * ws[3]
        w = jax.random.normal(kw, ws, jnp.float32) / np.sqrt(fan_in)
        b = jax.random.normal(kb, bs, jnp.float32) * 0.01
        params.append((w, b))
    return params


def reference_forward(obs_nchw, params):
    """Pure-JAX f32 reference (lax.conv) matching the PyTorch module."""
    strides = [2, 1, 1, 1]
    x = obs_nchw.astype(jnp.float32) / 255.0 - 0.5
    for (w, b), s in zip(params, strides):
        x = lax.conv_general_dilated(
            x, w, window_strides=(s, s), padding="VALID",
            dimension_numbers=("NCHW", "OIHW", "NCHW"))
        x = jnp.maximum(x + b.reshape(1, -1, 1, 1), 0.0)
    return x.reshape(x.shape[0], -1)


# --------------------------------- main ------------------------------------ #

if __name__ == "__main__":
    key = jax.random.PRNGKey(0)
    k_obs, k_par = jax.random.split(key)

    N, Cin, H, W = 2, 4, 16, 16
    # uint8-like observation values in [0, 255]
    obs = jax.random.randint(k_obs, (N, Cin, H, W), 0, 256).astype(jnp.float32)
    params = init_params(k_par, Cin)
    w1_mat, w234, biases = prepare_params(params)

    h = jax.block_until_ready(encoder_forward(obs, w1_mat, w234, biases))
    h_ref = jax.block_until_ready(reference_forward(obs, params))

    # bf16 MXU operands (f32 accumulation) -> looser tolerance than pure f32.
    np.testing.assert_allclose(np.asarray(h), np.asarray(h_ref),
                               rtol=5e-2, atol=3e-2)

    assert h.shape == (N, 32 * 1 * 1)  # 16 -> 7 -> 5 -> 3 -> 1 spatial
    print("KERNEL_OK")
</pallas_src>

<mosaic_0001>
module attributes {stable_mosaic.version = 11 : i64} {
  func.func @_encoder_kernel(%arg0: i32, %arg1: memref<1x49x36xbf16, #tpu.memory_space<vmem>>, %arg2: memref<36x32xbf16, #tpu.memory_space<vmem>>, %arg3: memref<3x9x32x32xbf16, #tpu.memory_space<vmem>>, %arg4: memref<4x32xf32, #tpu.memory_space<vmem>>, %arg5: memref<1x49x32xf32, #tpu.memory_space<vmem>>, %arg6: memref<49x32xbf16, #tpu.memory_space<vmem>>, %arg7: memref<49x32xbf16, #tpu.memory_space<vmem>>, %arg8: memref<49x32xbf16, #tpu.memory_space<vmem>>) attributes {dimension_semantics = [#tpu.dimension_semantics<parallel>], iteration_bounds = array<i64: 2>, scalar_prefetch = 0 : i64, scratch_operands = 3 : i64, tpu.core_type = #tpu.core_type<tc>, window_params = [{transform_indices = @transform_0, window_bounds = array<i64: 1, 49, 36>}, {pipeline_mode = #tpu.pipeline_mode<synchronous>, transform_indices = @transform_1, window_bounds = array<i64: 36, 32>}, {pipeline_mode = #tpu.pipeline_mode<synchronous>, transform_indices = @transform_2, window_bounds = array<i64: 3, 9, 32, 32>}, {pipeline_mode = #tpu.pipeline_mode<synchronous>, transform_indices = @transform_3, window_bounds = array<i64: 4, 32>}, {transform_indices = @transform_4, window_bounds = array<i64: 1, 49, 32>}]} {
    %c0 = arith.constant 0 : index
    %c0_0 = arith.constant 0 : index
    %c0_1 = arith.constant 0 : index
    %0 = vector.load %arg1[%c0, %c0_0, %c0_1] : memref<1x49x36xbf16, #tpu.memory_space<vmem>>, vector<1x49x36xbf16>
    %1 = vector.shape_cast %0 : vector<1x49x36xbf16> to vector<49x36xbf16>
    %c0_2 = arith.constant 0 : index
    %c0_3 = arith.constant 0 : index
    %2 = vector.load %arg2[%c0_2, %c0_3] : memref<36x32xbf16, #tpu.memory_space<vmem>>, vector<36x32xbf16>
    %cst = arith.constant dense<0.000000e+00> : vector<49x32xf32>
    %3 = tpu.matmul %1, %2, %cst {dimension_numbers = #tpu.dot_dimension_numbers<[1], [0], [0], [1], [0, 0, 1, 1], [], []>} : vector<49x36xbf16>, vector<36x32xbf16>, vector<49x32xf32> -> vector<49x32xf32>
    %c0_4 = arith.constant 0 : index
    %c0_5 = arith.constant 0 : index
    %4 = vector.load %arg4[%c0_4, %c0_5] : memref<4x32xf32, #tpu.memory_space<vmem>>, vector<1x32xf32>
    %5 = vector.broadcast %4 : vector<1x32xf32> to vector<49x32xf32>
    %6 = arith.addf %3, %5 : vector<49x32xf32>
    %cst_6 = arith.constant 0.000000e+00 : f32
    %7 = vector.broadcast %cst_6 : f32 to vector<49x32xf32>
    %8 = arith.maximumf %6, %7 : vector<49x32xf32>
    %9 = arith.truncf %8 : vector<49x32xf32> to vector<49x32xbf16>
    %c0_7 = arith.constant 0 : index
    %c0_8 = arith.constant 0 : index
    %10 = vector.load %arg6[%c0_7, %c0_8] : memref<49x32xbf16, #tpu.memory_space<vmem>>, vector<49x32xbf16>
    tpu.vector_store %arg6[%c0_7, %c0_8], %9 {strides = array<i32>} : memref<49x32xbf16, #tpu.memory_space<vmem>>, vector<49x32xbf16>,
    %c0_9 = arith.constant 0 : index
    %c0_10 = arith.constant 0 : index
    %11 = vector.load %arg6[%c0_9, %c0_10] : memref<49x32xbf16, #tpu.memory_space<vmem>>, vector<33x32xbf16>
    %c0_11 = arith.constant 0 : index
    %c0_12 = arith.constant 0 : index
    %c0_13 = arith.constant 0 : index
    %c0_14 = arith.constant 0 : index
    %12 = vector.load %arg3[%c0_11, %c0_12, %c0_13, %c0_14] : memref<3x9x32x32xbf16, #tpu.memory_space<vmem>>, vector<1x1x32x32xbf16>
    %13 = vector.shape_cast %12 : vector<1x1x32x32xbf16> to vector<32x32xbf16>
    %cst_15 = arith.constant dense<0.000000e+00> : vector<33x32xf32>
    %14 = tpu.matmul %11, %13, %cst_15 {dimension_numbers = #tpu.dot_dimension_numbers<[1], [0], [0], [1], [0, 0, 1, 1], [], []>} : vector<33x32xbf16>, vector<32x32xbf16>, vector<33x32xf32> -> vector<33x32xf32>
    %c1 = arith.constant 1 : index
    %c0_16 = arith.constant 0 : index
    %15 = vector.load %arg6[%c1, %c0_16] : memref<49x32xbf16, #tpu.memory_space<vmem>>, vector<33x32xbf16>
    %c0_17 = arith.constant 0 : index
    %c1_18 = arith.constant 1 : index
    %c0_19 = arith.constant 0 : index
    %c0_20 = arith.constant 0 : index
    %16 = vector.load %arg3[%c0_17, %c1_18, %c0_19, %c0_20] : memref<3x9x32x32xbf16, #tpu.memory_space<vmem>>, vector<1x1x32x32xbf16>
    %17 = vector.shape_cast %16 : vector<1x1x32x32xbf16> to vector<32x32xbf16>
    %cst_21 = arith.constant dense<0.000000e+00> : vector<33x32xf32>
    %18 = tpu.matmul %15, %17, %cst_21 {dimension_numbers = #tpu.dot_dimension_numbers<[1], [0], [0], [1], [0, 0, 1, 1], [], []>} : vector<33x32xbf16>, vector<32x32xbf16>, vector<33x32xf32> -> vector<33x32xf32>
    %19 = arith.addf %14, %18 : vector<33x32xf32>
    %c2 = arith.constant 2 : index
    %c0_22 = arith.constant 0 : index
    %20 = vector.load %arg6[%c2, %c0_22] : memref<49x32xbf16, #tpu.memory_space<vmem>>, vector<33x32xbf16>
    %c0_23 = arith.constant 0 : index
    %c2_24 = arith.constant 2 : index
    %c0_25 = arith.constant 0 : index
    %c0_26 = arith.constant 0 : index
    %21 = vector.load %arg3[%c0_23, %c2_24, %c0_25, %c0_26] : memref<3x9x32x32xbf16, #tpu.memory_space<vmem>>, vector<1x1x32x32xbf16>
    %22 = vector.shape_cast %21 : vector<1x1x32x32xbf16> to vector<32x32xbf16>
    %cst_27 = arith.constant dense<0.000000e+00> : vector<33x32xf32>
    %23 = tpu.matmul %20, %22, %cst_27 {dimension_numbers = #tpu.dot_dimension_numbers<[1], [0], [0], [1], [0, 0, 1, 1], [], []>} : vector<33x32xbf16>, vector<32x32xbf16>, vector<33x32xf32> -> vector<33x32xf32>
    %24 = arith.addf %19, %23 : vector<33x32xf32>
    %c7 = arith.constant 7 : index
    %c0_28 = arith.constant 0 : index
    %25 = vector.load %arg6[%c7, %c0_28] : memref<49x32xbf16, #tpu.memory_space<vmem>>, vector<33x32xbf16>
    %c0_29 = arith.constant 0 : index
    %c3 = arith.constant 3 : index
    %c0_30 = arith.constant 0 : index
    %c0_31 = arith.constant 0 : index
    %26 = vector.load %arg3[%c0_29, %c3, %c0_30, %c0_31] : memref<3x9x32x32xbf16, #tpu.memory_space<vmem>>, vector<1x1x32x32xbf16>
    %27 = vector.shape_cast %26 : vector<1x1x32x32xbf16> to vector<32x32xbf16>
    %cst_32 = arith.constant dense<0.000000e+00> : vector<33x32xf32>
    %28 = tpu.matmul %25, %27, %cst_32 {dimension_numbers = #tpu.dot_dimension_numbers<[1], [0], [0], [1], [0, 0, 1, 1], [], []>} : vector<33x32xbf16>, vector<32x32xbf16>, vector<33x32xf32> -> vector<33x32xf32>
    %29 = arith.addf %24, %28 : vector<33x32xf32>
    %c8 = arith.constant 8 : index
    %c0_33 = arith.constant 0 : index
    %30 = vector.load %arg6[%c8, %c0_33] : memref<49x32xbf16, #tpu.memory_space<vmem>>, vector<33x32xbf16>
    %c0_34 = arith.constant 0 : index
    %c4 = arith.constant 4 : index
    %c0_35 = arith.constant 0 : index
    %c0_36 = arith.constant 0 : index
    %31 = vector.load %arg3[%c0_34, %c4, %c0_35, %c0_36] : memref<3x9x32x32xbf16, #tpu.memory_space<vmem>>, vector<1x1x32x32xbf16>
    %32 = vector.shape_cast %31 : vector<1x1x32x32xbf16> to vector<32x32xbf16>
    %cst_37 = arith.constant dense<0.000000e+00> : vector<33x32xf32>
    %33 = tpu.matmul %30, %32, %cst_37 {dimension_numbers = #tpu.dot_dimension_numbers<[1], [0], [0], [1], [0, 0, 1, 1], [], []>} : vector<33x32xbf16>, vector<32x32xbf16>, vector<33x32xf32> -> vector<33x32xf32>
    %34 = arith.addf %29, %33 : vector<33x32xf32>
    %c9 = arith.constant 9 : index
    %c0_38 = arith.constant 0 : index
    %35 = vector.load %arg6[%c9, %c0_38] : memref<49x32xbf16, #tpu.memory_space<vmem>>, vector<33x32xbf16>
    %c0_39 = arith.constant 0 : index
    %c5 = arith.constant 5 : index
    %c0_40 = arith.constant 0 : index
    %c0_41 = arith.constant 0 : index
    %36 = vector.load %arg3[%c0_39, %c5, %c0_40, %c0_41] : memref<3x9x32x32xbf16, #tpu.memory_space<vmem>>, vector<1x1x32x32xbf16>
    %37 = vector.shape_cast %36 : vector<1x1x32x32xbf16> to vector<32x32xbf16>
    %cst_42 = arith.constant dense<0.000000e+00> : vector<33x32xf32>
    %38 = tpu.matmul %35, %37, %cst_42 {dimension_numbers = #tpu.dot_dimension_numbers<[1], [0], [0], [1], [0, 0, 1, 1], [], []>} : vector<33x32xbf16>, vector<32x32xbf16>, vector<33x32xf32> -> vector<33x32xf32>
    %39 = arith.addf %34, %38 : vector<33x32xf32>
    %c14 = arith.constant 14 : index
    %c0_43 = arith.constant 0 : index
    %40 = vector.load %arg6[%c14, %c0_43] : memref<49x32xbf16, #tpu.memory_space<vmem>>, vector<33x32xbf16>
    %c0_44 = arith.constant 0 : index
    %c6 = arith.constant 6 : index
    %c0_45 = arith.constant 0 : index
    %c0_46 = arith.constant 0 : index
    %41 = vector.load %arg3[%c0_44, %c6, %c0_45, %c0_46] : memref<3x9x32x32xbf16, #tpu.memory_space<vmem>>, vector<1x1x32x32xbf16>
    %42 = vector.shape_cast %41 : vector<1x1x32x32xbf16> to vector<32x32xbf16>
    %cst_47 = arith.constant dense<0.000000e+00> : vector<33x32xf32>
    %43 = tpu.matmul %40, %42, %cst_47 {dimension_numbers = #tpu.dot_dimension_numbers<[1], [0], [0], [1], [0, 0, 1, 1], [], []>} : vector<33x32xbf16>, vector<32x32xbf16>, vector<33x32xf32> -> vector<33x32xf32>
    %44 = arith.addf %39, %43 : vector<33x32xf32>
    %c15 = arith.constant 15 : index
    %c0_48 = arith.constant 0 : index
    %45 = vector.load %arg6[%c15, %c0_48] : memref<49x32xbf16, #tpu.memory_space<vmem>>, vector<33x32xbf16>
    %c0_49 = arith.constant 0 : index
    %c7_50 = arith.constant 7 : index
    %c0_51 = arith.constant 0 : index
    %c0_52 = arith.constant 0 : index
    %46 = vector.load %arg3[%c0_49, %c7_50, %c0_51, %c0_52] : memref<3x9x32x32xbf16, #tpu.memory_space<vmem>>, vector<1x1x32x32xbf16>
    %47 = vector.shape_cast %46 : vector<1x1x32x32xbf16> to vector<32x32xbf16>
    %cst_53 = arith.constant dense<0.000000e+00> : vector<33x32xf32>
    %48 = tpu.matmul %45, %47, %cst_53 {dimension_numbers = #tpu.dot_dimension_numbers<[1], [0], [0], [1], [0, 0, 1, 1], [], []>} : vector<33x32xbf16>, vector<32x32xbf16>, vector<33x32xf32> -> vector<33x32xf32>
    %49 = arith.addf %44, %48 : vector<33x32xf32>
    %c16 = arith.constant 16 : index
    %c0_54 = arith.constant 0 : index
    %50 = vector.load %arg6[%c16, %c0_54] : memref<49x32xbf16, #tpu.memory_space<vmem>>, vector<33x32xbf16>
    %c0_55 = arith.constant 0 : index
    %c8_56 = arith.constant 8 : index
    %c0_57 = arith.constant 0 : index
    %c0_58 = arith.constant 0 : index
    %51 = vector.load %arg3[%c0_55, %c8_56, %c0_57, %c0_58] : memref<3x9x32x32xbf16, #tpu.memory_space<vmem>>, vector<1x1x32x32xbf16>
    %52 = vector.shape_cast %51 : vector<1x1x32x32xbf16> to vector<32x32xbf16>
    %cst_59 = arith.constant dense<0.000000e+00> : vector<33x32xf32>
    %53 = tpu.matmul %50, %52, %cst_59 {dimension_numbers = #tpu.dot_dimension_numbers<[1], [0], [0], [1], [0, 0, 1, 1], [], []>} : vector<33x32xbf16>, vector<32x32xbf16>, vector<33x32xf32> -> vector<33x32xf32>
    %54 = arith.addf %49, %53 : vector<33x32xf32>
    %c1_60 = arith.constant 1 : index
    %c0_61 = arith.constant 0 : index
    %55 = vector.load %arg4[%c1_60, %c0_61] : memref<4x32xf32, #tpu.memory_space<vmem>>, vector<1x32xf32>
    %56 = vector.broadcast %55 : vector<1x32xf32> to vector<33x32xf32>
    %57 = arith.addf %54, %56 : vector<33x32xf32>
    %cst_62 = arith.constant 0.000000e+00 : f32
    %58 = vector.broadcast %cst_62 : f32 to vector<33x32xf32>
    %59 = arith.maximumf %57, %58 : vector<33x32xf32>
    %60 = arith.truncf %59 : vector<33x32xf32> to vector<33x32xbf16>
    %c0_63 = arith.constant 0 : index
    %c0_64 = arith.constant 0 : index
    %61 = vector.load %arg7[%c0_63, %c0_64] : memref<49x32xbf16, #tpu.memory_space<vmem>>, vector<33x32xbf16>
    tpu.vector_store %arg7[%c0_63, %c0_64], %60 {strides = array<i32>} : memref<49x32xbf16, #tpu.memory_space<vmem>>, vector<33x32xbf16>,
    %c0_65 = arith.constant 0 : index
    %c0_66 = arith.constant 0 : index
    %62 = vector.load %arg7[%c0_65, %c0_66] : memref<49x32xbf16, #tpu.memory_space<vmem>>, vector<17x32xbf16>
    %c1_67 = arith.constant 1 : index
    %c0_68 = arith.constant 0 : index
    %c0_69 = arith.constant 0 : index
    %c0_70 = arith.constant 0 : index
    %63 = vector.load %arg3[%c1_67, %c0_68, %c0_69, %c0_70] : memref<3x9x32x32xbf16, #tpu.memory_space<vmem>>, vector<1x1x32x32xbf16>
    %64 = vector.shape_cast %63 : vector<1x1x32x32xbf16> to vector<32x32xbf16>
    %cst_71 = arith.constant dense<0.000000e+00> : vector<17x32xf32>
    %65 = tpu.matmul %62, %64, %cst_71 {dimension_numbers = #tpu.dot_dimension_numbers<[1], [0], [0], [1], [0, 0, 1, 1], [], []>} : vector<17x32xbf16>, vector<32x32xbf16>, vector<17x32xf32> -> vector<17x32xf32>
    %c1_72 = arith.constant 1 : index
    %c0_73 = arith.constant 0 : index
    %66 = vector.load %arg7[%c1_72, %c0_73] : memref<49x32xbf16, #tpu.memory_space<vmem>>, vector<17x32xbf16>
    %c1_74 = arith.constant 1 : index
    %c1_75 = arith.constant 1 : index
    %c0_76 = arith.constant 0 : index
    %c0_77 = arith.constant 0 : index
    %67 = vector.load %arg3[%c1_74, %c1_75, %c0_76, %c0_77] : memref<3x9x32x32xbf16, #tpu.memory_space<vmem>>, vector<1x1x32x32xbf16>
    %68 = vector.shape_cast %67 : vector<1x1x32x32xbf16> to vector<32x32xbf16>
    %cst_78 = arith.constant dense<0.000000e+00> : vector<17x32xf32>
    %69 = tpu.matmul %66, %68, %cst_78 {dimension_numbers = #tpu.dot_dimension_numbers<[1], [0], [0], [1], [0, 0, 1, 1], [], []>} : vector<17x32xbf16>, vector<32x32xbf16>, vector<17x32xf32> -> vector<17x32xf32>
    %70 = arith.addf %65, %69 : vector<17x32xf32>
    %c2_79 = arith.constant 2 : index
    %c0_80 = arith.constant 0 : index
    %71 = vector.load %arg7[%c2_79, %c0_80] : memref<49x32xbf16, #tpu.memory_space<vmem>>, vector<17x32xbf16>
    %c1_81 = arith.constant 1 : index
    %c2_82 = arith.constant 2 : index
    %c0_83 = arith.constant 0 : index
    %c0_84 = arith.constant 0 : index
    %72 = vector.load %arg3[%c1_81, %c2_82, %c0_83, %c0_84] : memref<3x9x32x32xbf16, #tpu.memory_space<vmem>>, vector<1x1x32x32xbf16>
    %73 = vector.shape_cast %72 : vector<1x1x32x32xbf16> to vector<32x32xbf16>
    %cst_85 = arith.constant dense<0.000000e+00> : vector<17x32xf32>
    %74 = tpu.matmul %71, %73, %cst_85 {dimension_numbers = #tpu.dot_dimension_numbers<[1], [0], [0], [1], [0, 0, 1, 1], [], []>} : vector<17x32xbf16>, vector<32x32xbf16>, vector<17x32xf32> -> vector<17x32xf32>
    %75 = arith.addf %70, %74 : vector<17x32xf32>
    %c7_86 = arith.constant 7 : index
    %c0_87 = arith.constant 0 : index
    %76 = vector.load %arg7[%c7_86, %c0_87] : memref<49x32xbf16, #tpu.memory_space<vmem>>, vector<17x32xbf16>
    %c1_88 = arith.constant 1 : index
    %c3_89 = arith.constant 3 : index
    %c0_90 = arith.constant 0 : index
    %c0_91 = arith.constant 0 : index
    %77 = vector.load %arg3[%c1_88, %c3_89, %c0_90, %c0_91] : memref<3x9x32x32xbf16, #tpu.memory_space<vmem>>, vector<1x1x32x32xbf16>
    %78 = vector.shape_cast %77 : vector<1x1x32x32xbf16> to vector<32x32xbf16>
    %cst_92 = arith.constant dense<0.000000e+00> : vector<17x32xf32>
    %79 = tpu.matmul %76, %78, %cst_92 {dimension_numbers = #tpu.dot_dimension_numbers<[1], [0], [0], [1], [0, 0, 1, 1], [], []>} : vector<17x32xbf16>, vector<32x32xbf16>, vector<17x32xf32> -> vector<17x32xf32>
    %80 = arith.addf %75, %79 : vector<17x32xf32>
    %c8_93 = arith.constant 8 : index
    %c0_94 = arith.constant 0 : index
    %81 = vector.load %arg7[%c8_93, %c0_94] : memref<49x32xbf16, #tpu.memory_space<vmem>>, vector<17x32xbf16>
    %c1_95 = arith.constant 1 : index
    %c4_96 = arith.constant 4 : index
    %c0_97 = arith.constant 0 : index
    %c0_98 = arith.constant 0 : index
    %82 = vector.load %arg3[%c1_95, %c4_96, %c0_97, %c0_98] : memref<3x9x32x32xbf16, #tpu.memory_space<vmem>>, vector<1x1x32x32xbf16>
    %83 = vector.shape_cast %82 : vector<1x1x32x32xbf16> to vector<32x32xbf16>
    %cst_99 = arith.constant dense<0.000000e+00> : vector<17x32xf32>
    %84 = tpu.matmul %81, %83, %cst_99 {dimension_numbers = #tpu.dot_dimension_numbers<[1], [0], [0], [1], [0, 0, 1, 1], [], []>} : vector<17x32xbf16>, vector<32x32xbf16>, vector<17x32xf32> -> vector<17x32xf32>
    %85 = arith.addf %80, %84 : vector<17x32xf32>
    %c9_100 = arith.constant 9 : index
    %c0_101 = arith.constant 0 : index
    %86 = vector.load %arg7[%c9_100, %c0_101] : memref<49x32xbf16, #tpu.memory_space<vmem>>, vector<17x32xbf16>
    %c1_102 = arith.constant 1 : index
    %c5_103 = arith.constant 5 : index
    %c0_104 = arith.constant 0 : index
    %c0_105 = arith.constant 0 : index
    %87 = vector.load %arg3[%c1_102, %c5_103, %c0_104, %c0_105] : memref<3x9x32x32xbf16, #tpu.memory_space<vmem>>, vector<1x1x32x32xbf16>
    %88 = vector.shape_cast %87 : vector<1x1x32x32xbf16> to vector<32x32xbf16>
    %cst_106 = arith.constant dense<0.000000e+00> : vector<17x32xf32>
    %89 = tpu.matmul %86, %88, %cst_106 {dimension_numbers = #tpu.dot_dimension_numbers<[1], [0], [0], [1], [0, 0, 1, 1], [], []>} : vector<17x32xbf16>, vector<32x32xbf16>, vector<17x32xf32> -> vector<17x32xf32>
    %90 = arith.addf %85, %89 : vector<17x32xf32>
    %c14_107 = arith.constant 14 : index
    %c0_108 = arith.constant 0 : index
    %91 = vector.load %arg7[%c14_107, %c0_108] : memref<49x32xbf16, #tpu.memory_space<vmem>>, vector<17x32xbf16>
    %c1_109 = arith.constant 1 : index
    %c6_110 = arith.constant 6 : index
    %c0_111 = arith.constant 0 : index
    %c0_112 = arith.constant 0 : index
    %92 = vector.load %arg3[%c1_109, %c6_110, %c0_111, %c0_112] : memref<3x9x32x32xbf16, #tpu.memory_space<vmem>>, vector<1x1x32x32xbf16>
    %93 = vector.shape_cast %92 : vector<1x1x32x32xbf16> to vector<32x32xbf16>
    %cst_113 = arith.constant dense<0.000000e+00> : vector<17x32xf32>
    %94 = tpu.matmul %91, %93, %cst_113 {dimension_numbers = #tpu.dot_dimension_numbers<[1], [0], [0], [1], [0, 0, 1, 1], [], []>} : vector<17x32xbf16>, vector<32x32xbf16>, vector<17x32xf32> -> vector<17x32xf32>
    %95 = arith.addf %90, %94 : vector<17x32xf32>
    %c15_114 = arith.constant 15 : index
    %c0_115 = arith.constant 0 : index
    %96 = vector.load %arg7[%c15_114, %c0_115] : memref<49x32xbf16, #tpu.memory_space<vmem>>, vector<17x32xbf16>
    %c1_116 = arith.constant 1 : index
    %c7_117 = arith.constant 7 : index
    %c0_118 = arith.constant 0 : index
    %c0_119 = arith.constant 0 : index
    %97 = vector.load %arg3[%c1_116, %c7_117, %c0_118, %c0_119] : memref<3x9x32x32xbf16, #tpu.memory_space<vmem>>, vector<1x1x32x32xbf16>
    %98 = vector.shape_cast %97 : vector<1x1x32x32xbf16> to vector<32x32xbf16>
    %cst_120 = arith.constant dense<0.000000e+00> : vector<17x32xf32>
    %99 = tpu.matmul %96, %98, %cst_120 {dimension_numbers = #tpu.dot_dimension_numbers<[1], [0], [0], [1], [0, 0, 1, 1], [], []>} : vector<17x32xbf16>, vector<32x32xbf16>, vector<17x32xf32> -> vector<17x32xf32>
    %100 = arith.addf %95, %99 : vector<17x32xf32>
    %c16_121 = arith.constant 16 : index
    %c0_122 = arith.constant 0 : index
    %101 = vector.load %arg7[%c16_121, %c0_122] : memref<49x32xbf16, #tpu.memory_space<vmem>>, vector<17x32xbf16>
    %c1_123 = arith.constant 1 : index
    %c8_124 = arith.constant 8 : index
    %c0_125 = arith.constant 0 : index
    %c0_126 = arith.constant 0 : index
    %102 = vector.load %arg3[%c1_123, %c8_124, %c0_125, %c0_126] : memref<3x9x32x32xbf16, #tpu.memory_space<vmem>>, vector<1x1x32x32xbf16>
    %103 = vector.shape_cast %102 : vector<1x1x32x32xbf16> to vector<32x32xbf16>
    %cst_127 = arith.constant dense<0.000000e+00> : vector<17x32xf32>
    %104 = tpu.matmul %101, %103, %cst_127 {dimension_numbers = #tpu.dot_dimension_numbers<[1], [0], [0], [1], [0, 0, 1, 1], [], []>} : vector<17x32xbf16>, vector<32x32xbf16>, vector<17x32xf32> -> vector<17x32xf32>
    %105 = arith.addf %100, %104 : vector<17x32xf32>
    %c2_128 = arith.constant 2 : index
    %c0_129 = arith.constant 0 : index
    %106 = vector.load %arg4[%c2_128, %c0_129] : memref<4x32xf32, #tpu.memory_space<vmem>>, vector<1x32xf32>
    %107 = vector.broadcast %106 : vector<1x32xf32> to vector<17x32xf32>
    %108 = arith.addf %105, %107 : vector<17x32xf32>
    %cst_130 = arith.constant 0.000000e+00 : f32
    %109 = vector.broadcast %cst_130 : f32 to vector<17x32xf32>
    %110 = arith.maximumf %108, %109 : vector<17x32xf32>
    %111 = arith.truncf %110 : vector<17x32xf32> to vector<17x32xbf16>
    %c0_131 = arith.constant 0 : index
    %c0_132 = arith.constant 0 : index
    %112 = vector.load %arg8[%c0_131, %c0_132] : memref<49x32xbf16, #tpu.memory_space<vmem>>, vector<17x32xbf16>
    tpu.vector_store %arg8[%c0_131, %c0_132], %111 {strides = array<i32>} : memref<49x32xbf16, #tpu.memory_space<vmem>>, vector<17x32xbf16>,
    %c0_133 = arith.constant 0 : index
    %c0_134 = arith.constant 0 : index
    %113 = vector.load %arg8[%c0_133, %c0_134] : memref<49x32xbf16, #tpu.memory_space<vmem>>, vector<1x32xbf16>
    %c2_135 = arith.constant 2 : index
    %c0_136 = arith.constant 0 : index
    %c0_137 = arith.constant 0 : index
    %c0_138 = arith.constant 0 : index
    %114 = vector.load %arg3[%c2_135, %c0_136, %c0_137, %c0_138] : memref<3x9x32x32xbf16, #tpu.memory_space<vmem>>, vector<1x1x32x32xbf16>
    %115 = vector.shape_cast %114 : vector<1x1x32x32xbf16> to vector<32x32xbf16>
    %cst_139 = arith.constant dense<0.000000e+00> : vector<1x32xf32>
    %116 = tpu.matmul %113, %115, %cst_139 {dimension_numbers = #tpu.dot_dimension_numbers<[1], [0], [0], [1], [0, 0, 1, 1], [], []>} : vector<1x32xbf16>, vector<32x32xbf16>, vector<1x32xf32> -> vector<1x32xf32>
    %c1_140 = arith.constant 1 : index
    %c0_141 = arith.constant 0 : index
    %117 = vector.load %arg8[%c1_140, %c0_141] : memref<49x32xbf16, #tpu.memory_space<vmem>>, vector<1x32xbf16>
    %c2_142 = arith.constant 2 : index
    %c1_143 = arith.constant 1 : index
    %c0_144 = arith.constant 0 : index
    %c0_145 = arith.constant 0 : index
    %118 = vector.load %arg3[%c2_142, %c1_143, %c0_144, %c0_145] : memref<3x9x32x32xbf16, #tpu.memory_space<vmem>>, vector<1x1x32x32xbf16>
    %119 = vector.shape_cast %118 : vector<1x1x32x32xbf16> to vector<32x32xbf16>
    %cst_146 = arith.constant dense<0.000000e+00> : vector<1x32xf32>
    %120 = tpu.matmul %117, %119, %cst_146 {dimension_numbers = #tpu.dot_dimension_numbers<[1], [0], [0], [1], [0, 0, 1, 1], [], []>} : vector<1x32xbf16>, vector<32x32xbf16>, vector<1x32xf32> -> vector<1x32xf32>
    %121 = arith.addf %116, %120 : vector<1x32xf32>
    %c2_147 = arith.constant 2 : index
    %c0_148 = arith.constant 0 : index
    %122 = vector.load %arg8[%c2_147, %c0_148] : memref<49x32xbf16, #tpu.memory_space<vmem>>, vector<1x32xbf16>
    %c2_149 = arith.constant 2 : index
    %c2_150 = arith.constant 2 : index
    %c0_151 = arith.constant 0 : index
    %c0_152 = arith.constant 0 : index
    %123 = vector.load %arg3[%c2_149, %c2_150, %c0_151, %c0_152] : memref<3x9x32x32xbf16, #tpu.memory_space<vmem>>, vector<1x1x32x32xbf16>
    %124 = vector.shape_cast %123 : vector<1x1x32x32xbf16> to vector<32x32xbf16>
    %cst_153 = arith.constant dense<0.000000e+00> : vector<1x32xf32>
    %125 = tpu.matmul %122, %124, %cst_153 {dimension_numbers = #tpu.dot_dimension_numbers<[1], [0], [0], [1], [0, 0, 1, 1], [], []>} : vector<1x32xbf16>, vector<32x32xbf16>, vector<1x32xf32> -> vector<1x32xf32>
    %126 = arith.addf %121, %125 : vector<1x32xf32>
    %c7_154 = arith.constant 7 : index
    %c0_155 = arith.constant 0 : index
    %127 = vector.load %arg8[%c7_154, %c0_155] : memref<49x32xbf16, #tpu.memory_space<vmem>>, vector<1x32xbf16>
    %c2_156 = arith.constant 2 : index
    %c3_157 = arith.constant 3 : index
    %c0_158 = arith.constant 0 : index
    %c0_159 = arith.constant 0 : index
    %128 = vector.load %arg3[%c2_156, %c3_157, %c0_158, %c0_159] : memref<3x9x32x32xbf16, #tpu.memory_space<vmem>>, vector<1x1x32x32xbf16>
    %129 = vector.shape_cast %128 : vector<1x1x32x32xbf16> to vector<32x32xbf16>
    %cst_160 = arith.constant dense<0.000000e+00> : vector<1x32xf32>
    %130 = tpu.matmul %127, %129, %cst_160 {dimension_numbers = #tpu.dot_dimension_numbers<[1], [0], [0], [1], [0, 0, 1, 1], [], []>} : vector<1x32xbf16>, vector<32x32xbf16>, vector<1x32xf32> -> vector<1x32xf32>
    %131 = arith.addf %126, %130 : vector<1x32xf32>
    %c8_161 = arith.constant 8 : index
    %c0_162 = arith.constant 0 : index
    %132 = vector.load %arg8[%c8_161, %c0_162] : memref<49x32xbf16, #tpu.memory_space<vmem>>, vector<1x32xbf16>
    %c2_163 = arith.constant 2 : index
    %c4_164 = arith.constant 4 : index
    %c0_165 = arith.constant 0 : index
    %c0_166 = arith.constant 0 : index
    %133 = vector.load %arg3[%c2_163, %c4_164, %c0_165, %c0_166] : memref<3x9x32x32xbf16, #tpu.memory_space<vmem>>, vector<1x1x32x32xbf16>
    %134 = vector.shape_cast %133 : vector<1x1x32x32xbf16> to vector<32x32xbf16>
    %cst_167 = arith.constant dense<0.000000e+00> : vector<1x32xf32>
    %135 = tpu.matmul %132, %134, %cst_167 {dimension_numbers = #tpu.dot_dimension_numbers<[1], [0], [0], [1], [0, 0, 1, 1], [], []>} : vector<1x32xbf16>, vector<32x32xbf16>, vector<1x32xf32> -> vector<1x32xf32>
    %136 = arith.addf %131, %135 : vector<1x32xf32>
    %c9_168 = arith.constant 9 : index
    %c0_169 = arith.constant 0 : index
    %137 = vector.load %arg8[%c9_168, %c0_169] : memref<49x32xbf16, #tpu.memory_space<vmem>>, vector<1x32xbf16>
    %c2_170 = arith.constant 2 : index
    %c5_171 = arith.constant 5 : index
    %c0_172 = arith.constant 0 : index
    %c0_173 = arith.constant 0 : index
    %138 = vector.load %arg3[%c2_170, %c5_171, %c0_172, %c0_173] : memref<3x9x32x32xbf16, #tpu.memory_space<vmem>>, vector<1x1x32x32xbf16>
    %139 = vector.shape_cast %138 : vector<1x1x32x32xbf16> to vector<32x32xbf16>
    %cst_174 = arith.constant dense<0.000000e+00> : vector<1x32xf32>
    %140 = tpu.matmul %137, %139, %cst_174 {dimension_numbers = #tpu.dot_dimension_numbers<[1], [0], [0], [1], [0, 0, 1, 1], [], []>} : vector<1x32xbf16>, vector<32x32xbf16>, vector<1x32xf32> -> vector<1x32xf32>
    %141 = arith.addf %136, %140 : vector<1x32xf32>
    %c14_175 = arith.constant 14 : index
    %c0_176 = arith.constant 0 : index
    %142 = vector.load %arg8[%c14_175, %c0_176] : memref<49x32xbf16, #tpu.memory_space<vmem>>, vector<1x32xbf16>
    %c2_177 = arith.constant 2 : index
    %c6_178 = arith.constant 6 : index
    %c0_179 = arith.constant 0 : index
    %c0_180 = arith.constant 0 : index
    %143 = vector.load %arg3[%c2_177, %c6_178, %c0_179, %c0_180] : memref<3x9x32x32xbf16, #tpu.memory_space<vmem>>, vector<1x1x32x32xbf16>
    %144 = vector.shape_cast %143 : vector<1x1x32x32xbf16> to vector<32x32xbf16>
    %cst_181 = arith.constant dense<0.000000e+00> : vector<1x32xf32>
    %145 = tpu.matmul %142, %144, %cst_181 {dimension_numbers = #tpu.dot_dimension_numbers<[1], [0], [0], [1], [0, 0, 1, 1], [], []>} : vector<1x32xbf16>, vector<32x32xbf16>, vector<1x32xf32> -> vector<1x32xf32>
    %146 = arith.addf %141, %145 : vector<1x32xf32>
    %c15_182 = arith.constant 15 : index
    %c0_183 = arith.constant 0 : index
    %147 = vector.load %arg8[%c15_182, %c0_183] : memref<49x32xbf16, #tpu.memory_space<vmem>>, vector<1x32xbf16>
    %c2_184 = arith.constant 2 : index
    %c7_185 = arith.constant 7 : index
    %c0_186 = arith.constant 0 : index
    %c0_187 = arith.constant 0 : index
    %148 = vector.load %arg3[%c2_184, %c7_185, %c0_186, %c0_187] : memref<3x9x32x32xbf16, #tpu.memory_space<vmem>>, vector<1x1x32x32xbf16>
    %149 = vector.shape_cast %148 : vector<1x1x32x32xbf16> to vector<32x32xbf16>
    %cst_188 = arith.constant dense<0.000000e+00> : vector<1x32xf32>
    %150 = tpu.matmul %147, %149, %cst_188 {dimension_numbers = #tpu.dot_dimension_numbers<[1], [0], [0], [1], [0, 0, 1, 1], [], []>} : vector<1x32xbf16>, vector<32x32xbf16>, vector<1x32xf32> -> vector<1x32xf32>
    %151 = arith.addf %146, %150 : vector<1x32xf32>
    %c16_189 = arith.constant 16 : index
    %c0_190 = arith.constant 0 : index
    %152 = vector.load %arg8[%c16_189, %c0_190] : memref<49x32xbf16, #tpu.memory_space<vmem>>, vector<1x32xbf16>
    %c2_191 = arith.constant 2 : index
    %c8_192 = arith.constant 8 : index
    %c0_193 = arith.constant 0 : index
    %c0_194 = arith.constant 0 : index
    %153 = vector.load %arg3[%c2_191, %c8_192, %c0_193, %c0_194] : memref<3x9x32x32xbf16, #tpu.memory_space<vmem>>, vector<1x1x32x32xbf16>
    %154 = vector.shape_cast %153 : vector<1x1x32x32xbf16> to vector<32x32xbf16>
    %cst_195 = arith.constant dense<0.000000e+00> : vector<1x32xf32>
    %155 = tpu.matmul %152, %154, %cst_195 {dimension_numbers = #tpu.dot_dimension_numbers<[1], [0], [0], [1], [0, 0, 1, 1], [], []>} : vector<1x32xbf16>, vector<32x32xbf16>, vector<1x32xf32> -> vector<1x32xf32>
    %156 = arith.addf %151, %155 : vector<1x32xf32>
    %c3_196 = arith.constant 3 : index
    %c0_197 = arith.constant 0 : index
    %157 = vector.load %arg4[%c3_196, %c0_197] : memref<4x32xf32, #tpu.memory_space<vmem>>, vector<1x32xf32>
    %158 = arith.addf %156, %157 : vector<1x32xf32>
    %cst_198 = arith.constant 0.000000e+00 : f32
    %159 = vector.broadcast %cst_198 : f32 to vector<1x32xf32>
    %160 = arith.maximumf %158, %159 : vector<1x32xf32>
    %c0_199 = arith.constant 0 : index
    %c0_200 = arith.constant 0 : index
    %c0_201 = arith.constant 0 : index
    %161 = vector.load %arg5[%c0_199, %c0_200, %c0_201] : memref<1x49x32xf32, #tpu.memory_space<vmem>>, vector<1x1x32xf32>
    %162 = vector.shape_cast %161 : vector<1x1x32xf32> to vector<1x32xf32>
    %163 = vector.shape_cast %160 : vector<1x32xf32> to vector<1x1x32xf32>
    tpu.vector_store %arg5[%c0_199, %c0_200, %c0_201], %163 {strides = array<i32>} : memref<1x49x32xf32, #tpu.memory_space<vmem>>, vector<1x1x32xf32>,
    %cst_202 = arith.constant 0.000000e+00 : f32
    %164 = vector.broadcast %cst_202 : f32 to vector<48x32xf32>
    %c0_203 = arith.constant 0 : index
    %c1_204 = arith.constant 1 : index
    %c0_205 = arith.constant 0 : index
    %165 = vector.load %arg5[%c0_203, %c1_204, %c0_205] : memref<1x49x32xf32, #tpu.memory_space<vmem>>, vector<1x48x32xf32>
    %166 = vector.shape_cast %165 : vector<1x48x32xf32> to vector<48x32xf32>
    %167 = vector.shape_cast %164 : vector<48x32xf32> to vector<1x48x32xf32>
    tpu.vector_store %arg5[%c0_203, %c1_204, %c0_205], %167 {strides = array<i32>} : memref<1x49x32xf32, #tpu.memory_space<vmem>>, vector<1x48x32xf32>,
    return
  }
  func.func @transform_0(%arg0: i32) -> (i32, i32, i32) {
    %c0_i32 = arith.constant 0 : i32
    %c0_i32_0 = arith.constant 0 : i32
    %c0_i32_1 = arith.constant 0 : i32
    return %arg0, %c0_i32, %c0_i32_0 : i32, i32, i32
  }
  func.func @transform_1(%arg0: i32) -> (i32, i32) {
    %c0_i32 = arith.constant 0 : i32
    %c0_i32_0 = arith.constant 0 : i32
    %c0_i32_1 = arith.constant 0 : i32
    return %c0_i32, %c0_i32_0 : i32, i32
  }
  func.func @transform_2(%arg0: i32) -> (i32, i32, i32, i32) {
    %c0_i32 = arith.constant 0 : i32
    %c0_i32_0 = arith.constant 0 : i32
    %c0_i32_1 = arith.constant 0 : i32
    %c0_i32_2 = arith.constant 0 : i32
    %c0_i32_3 = arith.constant 0 : i32
    return %c0_i32, %c0_i32_0, %c0_i32_1, %c0_i32_2 : i32, i32, i32, i32
  }
  func.func @transform_3(%arg0: i32) -> (i32, i32) {
    %c0_i32 = arith.constant 0 : i32
    %c0_i32_0 = arith.constant 0 : i32
    %c0_i32_1 = arith.constant 0 : i32
    return %c0_i32, %c0_i32_0 : i32, i32
  }
  func.func @transform_4(%arg0: i32) -> (i32, i32, i32) {
    %c0_i32 = arith.constant 0 : i32
    %c0_i32_0 = arith.constant 0 : i32
    %c0_i32_1 = arith.constant 0 : i32
    return %arg0, %c0_i32, %c0_i32_0 : i32, i32, i32
  }
}

</mosaic_0001>

<bundles_post_ra>
// kernel: encoder_forward.1
= control target key start
LH: loop header
LB: loop body
LE: loop exit
PB: predicated region body
PF: predicated region fallthrough
CT: control target
= control target key end

     0   :  { %s2477_s15 = smov 0   ;;  %s2888_s0 = inlined_call_operand.vmem [shape: bf16[2,49,36], index: 0, kind: input, shape index: {}]   ;;  %s2889_s1 = inlined_call_operand.vmem [shape: bf16[36,32], index: 1, kind: input, shape index: {}]   ;;  %s2890_s2 = inlined_call_operand.vmem [shape: bf16[3,9,32,32], index: 2, kind: input, shape index: {}]   ;;  %s2891_s3 = inlined_call_operand.vmem [shape: f32[4,32], index: 3, kind: input, shape index: {}]   ;;  %s2892_s4 = inlined_call_operand.vmem [shape: f32[2,49,32], index: 4, kind: output, shape index: {}]  }
   0x1 LB: > { %s1924_s16 = sadd.s32 4294967295, %s2449_s15   ;;  %p1928_p0 = scmp.ge.s32.totalorder %s2449_s15, 1  ;;  %s2449_s15 = sphi %s2477_s15, %s14_s15  }
   0x2   : > { %p162_p1 = scmp.lt.s32.totalorder %s2449_s15, 3 }
   0x4   : > { %p163_p2 = pnand %p1928_p0, %p162_p1 }
   0x5   : > { %p188_p3 = scmp.lt.s32.totalorder (!%p163_p2), %s1924_s16, 1 }
   0x6   : > { %166 = sbr.rel (%p163_p2) target bundleno = 855 (0x357), region = 36 }
   0xb   : > { %v210_v0 = vld [vmem:[%s2889_s1 + $0x10] sm:$0x3]  ;;  %vm259_vm0 = vcmask 1041408   ;;  %s2896_s16 = smov (!%p188_p3, %s1924_s16), 1  ;;  %v2355_v4 = vld [vmem:[%s2889_s1 + $0x8] sm:$0xff]  ;;  %vm380_vm1 = vcmask 261120  }
   0xc   : > { %v240_v1 = vunpack.c.l.b16 %v210_v0  ;;  %s2424_s19 = smul.u32 56, %s2896_s16  ;;  %v2451_v5 = vmov 0.0   ;;  %v2354_v6 = vld [vmem:[%s2889_s1] sm:$0xff]  ;;  %vm246_vm2 = vcmask 293888   ;;  %v2358_v10 = vld [vmem:[%s2890_s2 + $0x8] sm:$0xff]  ;;  %vm305_vm3 = vcmask 257024  }
   0xd   : > { %s2423_s22 = smul.u32 28, %s2896_s16  ;;  %437 = vmatpush.bf16.msra.mxu2 %v2358_v10  ;;  %v2357_v11 = vld [vmem:[%s2890_s2] sm:$0xff]  ;;  %v2362_v18 = vld [vmem:[%s2890_s2 + $0x28] sm:$0xff]  ;;  %v2360_v20 = vld [vmem:[%s2890_s2 + $0x18] sm:$0xff]  ;;  %vm467_vm4 = vcmask 1046528   ;;  %vm764_vm6 = vcmask 1044480  }
   0xe   : > { %v243_v2 = vpack.c.b16 %v240_v1, %v240_v1  ;;  %s2494_s25 = scalar_lea.vmem %s2892_s4, %s2424_s19  ;;  %v2523_v15 = vld [vmem:[%s2891_s3] ss:$0 sm:$0xff]  ;;  %500 = vmatpush.bf16.msra.mxu3 %v2362_v18  ;;  %396 = vmatpush.bf16.msra.mxu1 %v2360_v20  ;;  %v2359_v24 = vld [vmem:[%s2890_s2 + $0x10] sm:$0xff]  ;;  %v2371_v26 = vld [vmem:[%s2890_s2 + $0x68] sm:$0xff]  ;;  %vm345_vm5 = vsmask.f32 7424 }
   0xf   : > { %1863 = vst.msk [vmem:[%s2494_s25 + $0x1] sm:$0xff] %vm380_vm1, %v2451_v5  ;;  %s192_s30 = scalar_lea.vmem %s2888_s0, %s2423_s22  ;;  %v2361_v22 = vld [vmem:[%s2890_s2 + $0x20] sm:$0xff]  ;;  %v2367_v30 = vld [vmem:[%s2890_s2 + $0x48] sm:$0xff]  ;;  %v2364_v31 = vld [vmem:[%s2890_s2 + $0x38] sm:$0xff]  ;;  %vm535_vm7 = vsmask.f32 4352 }
  0x10   : > { %v261_v3 = vsel %vm259_vm0, %v243_v2, 0  ;;  %1864 = vst.msk [vmem:[%s2494_s25 + $0x9] sm:$0xff] %vm380_vm1, %v2451_v5  ;;  %v2351_v7 = vld [vmem:[%s192_s30] sm:$0xff]  ;;  %v2352_v8 = vld [vmem:[%s192_s30 + $0x8] sm:$0xff]  ;;  %v2353_v9 = vld [vmem:[%s192_s30 + $0x10] sm:$0xff]  ;;  %vm312_vm8 = vcmask 253952  }
  0x11   : > { %268 = vmatpush.bf16.msra.mxu0 %v261_v3  ;;  %1865 = vst.msk [vmem:[%s2494_s25 + $0x11] sm:$0xff] %vm380_vm1, %v2451_v5  ;;  %v205_v12 = vld [vmem:[%s192_s30 + $0x18] sm:$0x1]  ;;  %438 = vmatpush.bf16.msra.mxu2 %v2357_v11  ;;  %v2370_v29 = vld [vmem:[%s2890_s2 + $0x60] sm:$0xff]  ;;  %v2363_v49 = vld [vmem:[%s2890_s2 + $0x30] sm:$0xff] }
  0x12   : > { %1866 = vst.msk [vmem:[%s2494_s25 + $0x19] sm:$0xff] %vm380_vm1, %v2451_v5  ;;  %v226_v13 = vunpack.c.l.b16 %v205_v12  ;;  %501 = vmatpush.bf16.msra.mxu3 %v2361_v22  ;;  %397 = vmatpush.bf16.msra.mxu1 %v2359_v24  ;;  %v2366_v41 = vld [vmem:[%s2890_s2 + $0x40] sm:$0xff]  ;;  %vm313_vm9 = vsmask.f32 256 }
  0x13   : > { %1867 = vst.msk [vmem:[%s2494_s25 + $0x21] sm:$0xff] %vm380_vm1, %v2451_v5  ;;  %vm2654_vm10 = vmand %vm312_vm8, %vm313_vm9 }
  0x14   : > { %1868 = vst.msk [vmem:[%s2494_s25 + $0x29] sm:$0xff] %vm380_vm1, %v2451_v5  ;;  %v230_v14 = vpack.c.b16 %v226_v13, %v226_v13 }
  0x15   : > { %269 = vmatpush.bf16.msra.mxu0 %v2355_v4  ;;  %656 = vmatpush.bf16.msrb.mxu2 %v2367_v30  ;;  %v2373_v30 = vld [vmem:[%s2890_s2 + $0x78] sm:$0xff] }
  0x16   : > { %584 = vmatpush.bf16.msrb.mxu1 %v2364_v31 }
  0x19   : > { %270 = vmatpush.bf16.msra.mxu0 %v2354_v6  ;;  %657 = vmatpush.bf16.msrb.mxu2 %v2366_v41  ;;  %v2369_v6 = vld [vmem:[%s2890_s2 + $0x58] sm:$0xff] }
  0x1a   : > { %585 = vmatpush.bf16.msrb.mxu1 %v2363_v49  ;;  %729 = vmatpush.bf16.msrb.mxu3 %v2369_v6 }
  0x1c   : > { %1951 = vmatmul.msk.bf16.vlgmr.msra.gmra.mxu0 %vm246_vm2, %v2351_v7 }
  0x1d   : > { %797 = vmatpush.bf16.msrb.mxu0 %v2371_v26 }
  0x21   : > { %798 = vmatpush.bf16.msrb.mxu0 %v2370_v29 }
  0x2c   : > { %1952 = vmatmul.msk.bf16.gmra.mxu0 %vm246_vm2, %v2352_v8 }
  0x3c   : > { %1953 = vmatmul.msk.bf16.gmra.mxu0 %vm246_vm2, %v2353_v9 }
  0x4c   : > { %1954 = vmatmul.msk.bf16.gmra.mxu0 %vm246_vm2, %v230_v14 }
  0x99   : > { %v272_v16 = vpop.f32.mrf.mxu0 }
  0x9a   : > { %v273_v17 = vadd.f32 %v2523_v15, %v272_v16 }
  0x9c   : > { %v291_v19 = vmax.f32 %v273_v17, 0.0 }
  0x9e   : > { %v298_v21 = vpack.c.bf16 %v291_v19, %v291_v19 }
  0xa0   : > { %306 = vst.msk [vmem:[#allocation2] sm:$0xf] %vm305_vm3, %v298_v21  ;;  %v2368_v21 = vld [vmem:[%s2890_s2 + $0x50] sm:$0xff] }
  0xa1   : > { %v274_v23 = vpop.f32.mrf.mxu0  ;;  %730 = vmatpush.bf16.msrb.mxu3 %v2368_v21 }
  0xa2   : > { %v275_v25 = vadd.f32 %v2523_v15, %v274_v23 }
  0xa4   : > { %v292_v27 = vmax.f32 %v275_v25, 0.0  ;;  %v2377_v25 = vld [vmem:[%s2890_s2 + $0x88] sm:$0xff] }
  0xa6   : > { %v299_v28 = vpack.c.bf16 %v292_v27, %v292_v27 }
  0xa7   : > { %v454_v42 = vld [vmem:[#allocation2] sm:$0xe] }
  0xa8   : > { %307 = vst.msk [vmem:[#allocation2 + $0x4] sm:$0xf] %vm305_vm3, %v299_v28  ;;  %v463_v47 = vunpack.c.l.b16 %v454_v42 }
  0xa9   : > { %v277_v32 = vpop.f32.mrf.mxu0 }
  0xaa   : > { %v278_v33 = vadd.f32 %v2523_v15, %v277_v32 }
  0xac   : > { %v293_v34 = vmax.f32 %v278_v33, 0.0  ;;  %v522_v33 = vld [vmem:[#allocation2] sm:$0x8] }
  0xae   : > { %v300_v35 = vpack.c.bf16 %v293_v34, %v293_v34 }
  0xaf   : > { %v2554_v36 = vld [vmem:[#allocation2] sm:$0xff]  }
  0xb0   : > { %308 = vst.msk [vmem:[#allocation2 + $0x8] sm:$0xf] %vm305_vm3, %v300_v35  ;;  %1982 = vmatmul.msk.bf16.vlgmr.msra.gmra.mxu2 %vm380_vm1, %v2554_v36  ;;  %v2418_v43 = vunpack.c.h.b16 %v2554_v36  ;;  %v349_v46 = vshll.u32 %v2554_v36, 16  ;;  %v347_v56 = vshrl.u32 %v2554_v36, 16  ;;  %v2445_v57 = vld [vmem:[#allocation2 + $0x4] sm:$0x8]  ;;  %v531_v35 = vunpack.c.l.b16 %v522_v33 }
  0xb1   : > { %v279_v37 = vpop.f32.mrf.mxu0  ;;  %944 = vmatpush.bf16.msra.mxu2 %v2377_v25 }
  0xb2   : > { %v280_v38 = vadd.f32 %v2523_v15, %v279_v37  ;;  %v465_v50 = vpack.c.b16 %v2418_v43, %v463_v47  ;;  %v351_v54 = vrot.slane %v349_v46, 1  ;;  %v2376_v37 = vld [vmem:[%s2890_s2 + $0x80] sm:$0xff] }
  0xb4   : > { %v294_v39 = vmax.f32 %v280_v38, 0.0  ;;  %v468_v59 = vrot.slane %v465_v50, 1  ;;  %v352_v0 = vor.u32 %v351_v54, %v347_v56  ;;  %v2372_v38 = vld [vmem:[%s2890_s2 + $0x70] sm:$0xff] }
  0xb5   : > { %945 = vmatpush.bf16.msra.mxu2 %v2376_v37 }
  0xb6   : > { %v301_v40 = vpack.c.bf16 %v294_v39, %v294_v39  ;;  %v533_v39 = vpack.c.b16 %v2418_v43, %v531_v35 }
  0xb7   : > { %v2572_v52 = vld [vmem:[#allocation2 + $0x4] sm:$0xff]  }
  0xb8   : > { %309 = vst.msk [vmem:[#allocation2 + $0xc] sm:$0xf] %vm305_vm3, %v301_v40  ;;  %v2444_v53 = vld [vmem:[#allocation2 + $0x4] sm:$0xf0]  ;;  %v685_v40 = vshll.u32 %v2572_v52, 16  ;;  %v537_v42 = vshrl.u32 %v533_v39, 16 }
  0xb9   : > { %v282_v44 = vpop.f32.mrf.mxu0  ;;  %v2588_v4 = vor.u32 %v2445_v57, %v2444_v53 }
  0xba   : > { %v283_v45 = vadd.f32 %v2523_v15, %v282_v44  ;;  %v540_v44 = vshll.u32 %v533_v39, 16  ;;  %v539_v36 = vrot.slane %v537_v42, 3 }
  0xbb   : > { %v765_v12 = vrot.slane %v2588_v4, 3 }
  0xbc   : > { %v295_v48 = vmax.f32 %v283_v45, 0.0  ;;  %v687_v45 = vrot.slane %v685_v40, 1  ;;  %v542_v43 = vrot.slane %v540_v44, 4 }
  0xbe   : > { %v302_v51 = vpack.c.bf16 %v295_v48, %v295_v48  ;;  %v683_v48 = vshrl.u32 %v2572_v52, 16  ;;  %v543_v57 = vor.u32 %v542_v43, %v539_v36 }
  0xbf   : > { %v2574_v55 = vld [vmem:[#allocation2 + $0x8] sm:$0xff] }
  0xc0   : > { %310 = vst.msk [vmem:[#allocation2 + $0x10] sm:$0xf] %vm305_vm3, %v302_v51  ;;  %1983 = vmatmul.msk.bf16.gmra.mxu2 %vm380_vm1, %v2574_v55  ;;  %v469_v60 = vrot.slane %v2574_v55, 1  ;;  %v354_v61 = vshll.u32 %v2574_v55, 16  ;;  %v358_v23 = vshrl.u32 %v2574_v55, 16  ;;  %v688_v51 = vor.u32 %v687_v45, %v683_v48 }
  0xc1   : > { %v284_v58 = vpop.f32.mrf.mxu0 }
  0xc2   : > { %v285_v62 = vadd.f32 %v2523_v15, %v284_v58  ;;  %v470_v63 = vsel %vm467_vm4, %v468_v59, %v469_v60  ;;  %v356_v1 = vrot.slane %v354_v61, 1  ;;  %v544_v46 = vrot.slane %v358_v23, 3 }
  0xc3   : > { %1997 = vmatmul.msk.bf16.vlgmr.msra.gmra.mxu3 %vm380_vm1, %v470_v63  ;;  %v545_v47 = vrot.slane %v354_v61, 4 }
  0xc4   : > { %v296_v2 = vmax.f32 %v285_v62, 0.0  ;;  %v357_v3 = vsel %vm345_vm5, %v352_v0, %v356_v1  ;;  %v360_v27 = vor.u32 %v358_v23, %v356_v1 }
  0xc5   : > { %1971 = vmatmul.msk.bf16.vlgmr.msra.gmra.mxu1 %vm380_vm1, %v357_v3  ;;  %v546_v53 = vor.u32 %v545_v47, %v544_v46 }
  0xc6   : > { %v303_v5 = vpack.c.bf16 %v296_v2, %v296_v2  ;;  %872 = vmatpush.bf16.msra.mxu1 %v2373_v30 }
  0xc7   : > { %v2594_v7 = vld [vmem:[#allocation2 + $0xc] sm:$0xff]  ;;  %v547_v55 = vsel %vm535_vm7, %v543_v57, %v546_v53 }
  0xc8   : > { %v322_v8 = vld [vmem:[#allocation2 + $0x10] sm:$0x1]  ;;  %311 = vst.msk [vmem:[#allocation2 + $0x14] sm:$0xf] %vm305_vm3, %v303_v5  ;;  %v766_v13 = vrot.slane %v2594_v7, 3  ;;  %v689_v41 = vshll.u32 %v2594_v7, 16 }
  0xc9   : > { %v455_v9 = vld [vmem:[#allocation2 + $0x10] sm:$0x3]  ;;  %v341_v10 = vunpack.c.l.b16 %v322_v8  ;;  %v693_v1 = vshrl.u32 %v2594_v7, 16 }
  0xca   : > { %v464_v11 = vunpack.c.l.b16 %v455_v9  ;;  %v767_v16 = vsel %vm764_vm6, %v765_v12, %v766_v13  ;;  %873 = vmatpush.bf16.msra.mxu1 %v2372_v38  ;;  %v691_v49 = vrot.slane %v689_v41, 1  ;;  %v287_v9 = vpop.f32.mrf.mxu0 }
  0xcb   : > { %v344_v14 = vpack.c.b16 %v341_v10, %v341_v10  ;;  %2061 = vmatmul.msk.bf16.vlgmr.msrb.gmra.mxu0 %vm380_vm1, %v767_v16  ;;  %v2374_v10 = vld [vmem:[#allocation2 + $0x8] sm:$0xff]  ;;  %v832_v21 = vrot.slane %v693_v1, 3 }
  0xcc   : > { %v466_v17 = vpack.c.b16 %v464_v11, %v464_v11  ;;  %v692_v56 = vsel %vm345_vm5, %v688_v51, %v691_v49  ;;  %v695_v3 = vor.u32 %v693_v1, %v691_v49  ;;  %v288_v11 = vadd.f32 %v2523_v15, %v287_v9 }
  0xcd   : > { %v362_v18 = vshll.u32 %v344_v14, 16  ;;  %v366_v34 = vshrl.u32 %v344_v14, 16 }
  0xce   : > { %v471_v19 = vrot.slane %v466_v17, 1 }
  0xcf   : > { %v752_v20 = vld [vmem:[#allocation2 + $0x10] sm:$0xff]   ;;  %v364_v24 = vrot.slane %v362_v18, 1  ;;  %v825_v18 = vshrl.u32 %v2588_v4, 16 }
  0xd0   : > { %v761_v22 = vunpack.c.h.b16 %v752_v20  ;;  %1984 = vmatmul.msk.bf16.gmra.mxu2 %vm380_vm1, %v344_v14  ;;  %v472_v26 = vsel %vm467_vm4, %v469_v60, %v471_v19  ;;  %v610_v50 = vld [vmem:[#allocation2 + $0x14] sm:$0x1]  ;;  %v532_v54 = vunpack.c.l.b16 %v752_v20  ;;  %v315_v14 = vld [vmem:[#allocation2 + $0x18] sm:$0x1]  ;;  %v833_v20 = vrot.slane %v689_v41, 4 }
  0xd1   : > { %v365_v29 = vsel %vm345_vm5, %v360_v27, %v364_v24  ;;  %v625_v58 = vunpack.c.l.b16 %v610_v50  ;;  %v827_v23 = vrot.slane %v825_v18, 3 }
  0xd2   : > { %v2610_v28 = vpack.c.b16 %v761_v22, %v761_v22  ;;  %v289_v15 = vpop.f32.mrf.mxu0  ;;  %v2375_v22 = vld [vmem:[#allocation2 + $0x10] sm:$0xff]  ;;  %v834_v25 = vor.u32 %v833_v20, %v832_v21 }
  0xd3   : > { %1998 = vmatmul.msk.bf16.gmra.mxu3 %vm380_vm1, %v472_v26  ;;  %v628_v59 = vpack.c.b16 %v625_v58, %v625_v58 }
  0xd4   : > { %v768_v31 = vrot.slane %v2610_v28, 3  ;;  %v837_v30 = vshrl.u32 %v2610_v28, 16 }
  0xd5   : > { %1972 = vmatmul.msk.bf16.gmra.mxu1 %vm380_vm1, %v365_v29  ;;  %v696_v62 = vshll.u32 %v628_v59, 16  ;;  %v700_v12 = vshrl.u32 %v628_v59, 16 }
  0xd6   : > { %v769_v32 = vsel %vm764_vm6, %v766_v13, %v768_v31 }
  0xd7   : > { %v698_v2 = vrot.slane %v696_v62, 1 }
  0xd9   : > { %v699_v6 = vsel %vm345_vm5, %v695_v3, %v698_v2 }
  0xdb   : > { %2062 = vmatmul.msk.bf16.gmra.mxu0 %vm380_vm1, %v769_v32 }
  0xe0   : > { %2031 = vmatmul.msk.bf16.vlgmr.msrb.gmra.mxu2 %vm380_vm1, %v2572_v52  ;;  %v534_v52 = vpack.c.b16 %v532_v54, %v532_v54 }
  0xe2   : > { %v549_v60 = vshrl.u32 %v534_v52, 16  ;;  %v552_v61 = vshll.u32 %v534_v52, 16 }
  0xe3   : > { %1999 = vmatmul.msk.bf16.gmra.mxu3 %vm380_vm1, %v471_v19  ;;  %v828_v19 = vshll.u32 %v2588_v4, 16  ;;  %v839_v4 = vrot.slane %v837_v30, 3 }
  0xe4   : > { %v551_v63 = vrot.slane %v549_v60, 3  ;;  %v554_v0 = vrot.slane %v552_v61, 4 }
  0xe5   : > { %1973 = vmatmul.msk.bf16.gmra.mxu1 %vm380_vm1, %v366_v34  ;;  %v830_v24 = vrot.slane %v828_v19, 4 }
  0xe6   : > { %v555_v5 = vor.u32 %v554_v0, %v551_v63 }
  0xe7   : > { %v831_v26 = vor.u32 %v830_v24, %v827_v23 }
  0xe8   : > { %v556_v8 = vsel %vm535_vm7, %v546_v53, %v555_v5 }
  0xe9   : > { %v835_v27 = vsel %vm535_vm7, %v831_v26, %v834_v25 }
  0xeb   : > { %2063 = vmatmul.msk.bf16.gmra.mxu0 %vm380_vm1, %v768_v31  ;;  %v840_v31 = vshll.u32 %v2610_v28, 16 }
  0xed   : > { %v842_v33 = vrot.slane %v840_v31, 4 }
  0xef   : > { %v843_v35 = vor.u32 %v842_v33, %v839_v4 }
  0xf0   : > { %2032 = vmatmul.msk.bf16.gmra.mxu2 %vm380_vm1, %v2594_v7  ;;  %v297_v7 = vmax.f32 %v288_v11, 0.0 }
  0xf1   : > { %v844_v38 = vsel %vm535_vm7, %v834_v25, %v843_v35  ;;  %v2378_v35 = vld [vmem:[%s2890_s2 + $0x90] sm:$0xff] }
  0xf2   : > { %v304_v16 = vpack.c.bf16 %v297_v7, %v297_v7 }
  0xf3   : > { %2046 = vmatmul.msk.bf16.vlgmr.msrb.gmra.mxu3 %vm380_vm1, %v692_v56 }
  0xf4   : > { %v316_v17 = vsel %vm2654_vm10, %v304_v16, %v315_v14 }
  0xf5   : > { %2012 = vmatmul.msk.bf16.vlgmr.msrb.gmra.mxu1 %vm380_vm1, %v547_v55  ;;  %317 = vst [vmem:[#allocation2 + $0x18] sm:$0x1] %v316_v17  ;;  %v2381_v17 = vld [vmem:[%s2890_s2 + $0xa8] sm:$0xff] }
  0xf6   : > { %1049 = vmatpush.bf16.msra.mxu3 %v2381_v17 }
  0xfc   : > { %v898_v29 = vld [vmem:[#allocation2 + $0x18] sm:$0x1] }
  0xfd   : > { %v913_v32 = vunpack.c.l.b16 %v898_v29 }
  0xff   : > { %v916_v34 = vpack.c.b16 %v913_v32, %v913_v32  ;;  %v2379_v32 = vld [vmem:[%s2890_s2 + $0x98] sm:$0xff] }
 0x100   : > { %2033 = vmatmul.msk.bf16.gmra.mxu2 %vm380_vm1, %v628_v59  ;;  %1083 = vmatpush.bf16.msra.mxu0 %v2379_v32 }
 0x103   : > { %2047 = vmatmul.msk.bf16.gmra.mxu3 %vm380_vm1, %v699_v6 }
 0x104   : > { %1084 = vmatpush.bf16.msra.mxu0 %v2378_v35 }
 0x105   : > { %2013 = vmatmul.msk.bf16.gmra.mxu1 %vm380_vm1, %v556_v8 }
 0x110   : > { %2099 = vmatmul.msk.bf16.vlgmr.msra.gmra.mxu2 %vm380_vm1, %v2374_v10 }
 0x113   : > { %2048 = vmatmul.msk.bf16.gmra.mxu3 %vm380_vm1, %v700_v12 }
 0x115   : > { %2014 = vmatmul.msk.bf16.gmra.mxu1 %vm380_vm1, %v551_v63 }
 0x120   : > { %2100 = vmatmul.msk.bf16.gmra.mxu2 %vm380_vm1, %v2375_v22 }
 0x125   : > { %2076 = vmatmul.msk.bf16.vlgmr.msra.gmra.mxu1 %vm380_vm1, %v835_v27 }
 0x130   : > { %2101 = vmatmul.msk.bf16.gmra.mxu2 %vm380_vm1, %v916_v34 }
 0x133   : > { %v440_v37 = vpop.f32.mrf.mxu2 }
 0x135   : > { %2077 = vmatmul.msk.bf16.gmra.mxu1 %vm380_vm1, %v844_v38 }
 0x13b   : > { %v442_v39 = vpop.f32.mrf.mxu2 }
 0x142   : > { %v399_v40 = vpop.f32.mrf.mxu1 }
 0x143   : > { %v441_v41 = vadd.f32 %v440_v37, %v399_v40  ;;  %v445_v42 = vpop.f32.mrf.mxu2 }
 0x145   : > { %2078 = vmatmul.msk.bf16.gmra.mxu1 %vm380_vm1, %v839_v4 }
 0x146   : > { %v503_v44 = vpop.f32.mrf.mxu3 }
 0x147   : > { %v517_v28 = vadd.f32 %v503_v44, %v441_v41  ;;  %v2380_v44 = vld [vmem:[%s2890_s2 + $0xa0] sm:$0xff] }
 0x148   : > { %v800_v45 = vpop.f32.mrf.mxu0  ;;  %1050 = vmatpush.bf16.msra.mxu3 %v2380_v44 }
 0x14a   : > { %v401_v46 = vpop.f32.mrf.mxu1 }
 0x14b   : > { %v2673_v47 = vpop.f32.mrf.mxu2  ;;  %v443_v34 = vadd.f32 %v442_v39, %v401_v46  ;;  %v2387_v39 = vld [vmem:[%s2890_s2 + $0xd8] sm:$0xff] }
 0x14c   : > { %1259 = vmatpush.bf16.msrb.mxu2 %v2387_v39  ;;  %v2393_v39 = vld [vmem:[%s2890_s2 + $0x108] sm:$0xff] }
 0x14e   : > { %v505_v48 = vpop.f32.mrf.mxu3 }
 0x14f   : > { %v518_v40 = vadd.f32 %v505_v48, %v443_v34  ;;  %v2703_v48 = vld [vmem:[%s2891_s3 + $0x1] ss:$0 sm:$0xff] }
 0x150   : > { %v2675_v49 = vpop.f32.mrf.mxu0 }
 0x152   : > { %v404_v36 = vpop.f32.mrf.mxu1 }
 0x153   : > { %v446_v43 = vadd.f32 %v445_v42, %v404_v36  ;;  %v450_v50 = vpop.f32.mrf.mxu2 }
 0x156   : > { %v508_v51 = vpop.f32.mrf.mxu3 }
 0x157   : > { %v519_v53 = vadd.f32 %v508_v51, %v446_v43 }
 0x158   : > { %v805_v54 = vpop.f32.mrf.mxu0 }
 0x15a   : > { %v2677_v56 = vpop.f32.mrf.mxu1 }
 0x15b   : > { %v452_v57 = vpop.f32.mrf.mxu2 }
 0x15c   : > { %v448_v57 = vadd.f32 %v2673_v47, %v2677_v56  ;;  %v2383_v47 = vld [vmem:[%s2890_s2 + $0xb8] sm:$0xff]  ;;  %v2384_v56 = vld [vmem:[%s2890_s2 + $0xc0] sm:$0xff] }
 0x15d   : > { %1135 = vmatpush.bf16.msrb.mxu3 %v2383_v47 }
 0x15e   : > { %v2679_v58 = vpop.f32.mrf.mxu3 }
 0x160   : > { %v2681_v55 = vpop.f32.mrf.mxu0 }
 0x162   : > { %v409_v52 = vpop.f32.mrf.mxu1 }
 0x163   : > { %v451_v59 = vadd.f32 %v450_v50, %v409_v52  ;;  %v659_v60 = vpop.f32.mrf.mxu2 }
 0x166   : > { %v513_v61 = vpop.f32.mrf.mxu3 }
 0x167   : > { %v521_v62 = vadd.f32 %v513_v61, %v451_v59  ;;  %v520_v61 = vadd.f32 %v2679_v58, %v448_v57 }
 0x168   : > { %v810_v63 = vpop.f32.mrf.mxu0 }
 0x16a   : > { %v411_v0 = vpop.f32.mrf.mxu1 }
 0x16b   : > { %v661_v1 = vpop.f32.mrf.mxu2 }
 0x16e   : > { %v515_v2 = vpop.f32.mrf.mxu3 }
 0x170   : > { %v812_v3 = vpop.f32.mrf.mxu0 }
 0x171   : > { %v2385_v3 = vld [vmem:[%s2890_s2 + $0xc8] sm:$0xff] }
 0x172   : > { %v587_v5 = vpop.f32.mrf.mxu1  ;;  %1204 = vmatpush.bf16.msrb.mxu1 %v2385_v3 }
 0x173   : > { %v601_v6 = vadd.f32 %v587_v5, %v517_v28  ;;  %v664_v8 = vpop.f32.mrf.mxu2 }
 0x175   : > { %v673_v9 = vadd.f32 %v659_v60, %v601_v6 }
 0x176   : > { %v732_v10 = vpop.f32.mrf.mxu3  ;;  %1205 = vmatpush.bf16.msrb.mxu1 %v2384_v56 }
 0x177   : > { %v746_v11 = vadd.f32 %v732_v10, %v673_v9 }
 0x179   : > { %v814_v7 = vadd.f32 %v800_v45, %v746_v11 }
 0x17a   : > { %v589_v12 = vpop.f32.mrf.mxu1  ;;  %1431 = vmatpush.bf16.msra.mxu1 %v2393_v39 }
 0x17b   : > { %v666_v14 = vpop.f32.mrf.mxu2  ;;  %v602_v42 = vadd.f32 %v589_v12, %v518_v40  ;;  %v2389_v12 = vld [vmem:[%s2890_s2 + $0xe8] sm:$0xff] }
 0x17c   : > { %1315 = vmatpush.bf16.msrb.mxu0 %v2389_v12 }
 0x17d   : > { %v674_v45 = vadd.f32 %v661_v1, %v602_v42 }
 0x17e   : > { %v734_v16 = vpop.f32.mrf.mxu3 }
 0x17f   : > { %v747_v50 = vadd.f32 %v734_v16, %v674_v45 }
 0x181   : > { %v815_v59 = vadd.f32 %v2675_v49, %v747_v50  ;;  %v987_v50 = vld [vmem:[#allocation3 + $0x10] sm:$0x1] }
 0x182   : > { %v592_v15 = vpop.f32.mrf.mxu1 }
 0x183   : > { %v603_v18 = vadd.f32 %v592_v15, %v519_v53  ;;  %v669_v19 = vpop.f32.mrf.mxu2  ;;  %v2386_v53 = vld [vmem:[%s2890_s2 + $0xd0] sm:$0xff]  ;;  %v2388_v15 = vld [vmem:[%s2890_s2 + $0xe0] sm:$0xff] }
 0x184   : > { %1260 = vmatpush.bf16.msrb.mxu2 %v2386_v53  ;;  %1316 = vmatpush.bf16.msrb.mxu0 %v2388_v15 }
 0x185   : > { %v675_v20 = vadd.f32 %v664_v8, %v603_v18 }
 0x186   : > { %v737_v21 = vpop.f32.mrf.mxu3 }
 0x187   : > { %v748_v22 = vadd.f32 %v737_v21, %v675_v20 }
 0x189   : > { %v816_v23 = vadd.f32 %v805_v54, %v748_v22 }
 0x18a   : > { %v594_v24 = vpop.f32.mrf.mxu1 }
 0x18b   : > { %v671_v25 = vpop.f32.mrf.mxu2  ;;  %v604_v1 = vadd.f32 %v594_v24, %v520_v61 }
 0x18d   : > { %v676_v58 = vadd.f32 %v666_v14, %v604_v1  ;;  %v2392_v1 = vld [vmem:[%s2890_s2 + $0x100] sm:$0xff] }
 0x18e   : > { %v739_v26 = vpop.f32.mrf.mxu3  ;;  %1432 = vmatpush.bf16.msra.mxu1 %v2392_v1 }
 0x18f   : > { %v749_v11 = vadd.f32 %v739_v26, %v676_v58  ;;  %v2396_v26 = vld [vmem:[%s2890_s2 + $0x118] sm:$0xff] }
 0x190   : > { %1486 = vmatpush.bf16.msra.mxu2 %v2396_v26 }
 0x191   : > { %v817_v14 = vadd.f32 %v2681_v55, %v749_v11  ;;  %v2382_v55 = vld [vmem:[%s2890_s2 + $0xb0] sm:$0xff] }
 0x192   : > { %v597_v27 = vpop.f32.mrf.mxu1  ;;  %1136 = vmatpush.bf16.msrb.mxu3 %v2382_v55 }
 0x193   : > { %v605_v29 = vadd.f32 %v597_v27, %v521_v62  ;;  %v947_v30 = vpop.f32.mrf.mxu2 }
 0x195   : > { %v677_v31 = vadd.f32 %v669_v19, %v605_v29 }
 0x196   : > { %v742_v4 = vpop.f32.mrf.mxu3 }
 0x197   : > { %v750_v33 = vadd.f32 %v742_v4, %v677_v31 }
 0x199   : > { %v2692_v37 = vadd.f32 %v810_v63, %v750_v33 }
 0x19a   : > { %v599_v38 = vpop.f32.mrf.mxu1 }
 0x19b   : > { %v949_v41 = vpop.f32.mrf.mxu2 }
 0x19e   : > { %v744_v28 = vpop.f32.mrf.mxu3 }
 0x1a2   : > { %v875_v46 = vpop.f32.mrf.mxu1 }
 0x1a3   : > { %v889_v36 = vadd.f32 %v875_v46, %v814_v7  ;;  %v952_v43 = vpop.f32.mrf.mxu2 }
 0x1a5   : > { %v961_v51 = vadd.f32 %v947_v30, %v889_v36 }
 0x1a7   : > { %v968_v54 = vadd.f32 %v2703_v48, %v961_v51 }
 0x1a9   : > { %v973_v52 = vmax.f32 %v968_v54, 0.0 }
 0x1aa   : > { %v877_v60 = vpop.f32.mrf.mxu1 }
 0x1ab   : > { %v978_v62 = vpack.c.bf16 %v973_v52, %v973_v52  ;;  %v890_v63 = vadd.f32 %v877_v60, %v815_v59  ;;  %v954_v0 = vpop.f32.mrf.mxu2 }
 0x1ad   : > { %983 = vst.msk [vmem:[#allocation3] sm:$0xf] %vm305_vm3, %v978_v62  ;;  %v962_v2 = vadd.f32 %v949_v41, %v890_v63  ;;  %v2395_v41 = vld [vmem:[%s2890_s2 + $0x110] sm:$0xff] }
 0x1ae   : > { %1487 = vmatpush.bf16.msra.mxu2 %v2395_v41 }
 0x1af   : > { %v969_v49 = vadd.f32 %v2703_v48, %v962_v2  ;;  %v2391_v2 = vld [vmem:[%s2890_s2 + $0xf8] sm:$0xff] }
 0x1b1   : > { %v974_v5 = vmax.f32 %v969_v49, 0.0 }
 0x1b2   : > { %v880_v6 = vpop.f32.mrf.mxu1 }
 0x1b3   : > { %v979_v8 = vpack.c.bf16 %v974_v5, %v974_v5  ;;  %v891_v9 = vadd.f32 %v880_v6, %v816_v23  ;;  %v957_v10 = vpop.f32.mrf.mxu2 }
 0x1b4   : > { %v1150_v31 = vld [vmem:[#allocation3] sm:$0x8] }
 0x1b5   : > { %984 = vst.msk [vmem:[#allocation3 + $0x4] sm:$0xf] %vm305_vm3, %v979_v8  ;;  %v963_v7 = vadd.f32 %v952_v43, %v891_v9  ;;  %v1159_v42 = vunpack.c.l.b16 %v1150_v31  ;;  %v1095_v55 = vld [vmem:[#allocation3] sm:$0xe] }
 0x1b6   : > { %v1104_v26 = vunpack.c.l.b16 %v1095_v55 }
 0x1b7   : > { %v970_v16 = vadd.f32 %v2703_v48, %v963_v7 }
 0x1b9   : > { %v975_v17 = vmax.f32 %v970_v16, 0.0 }
 0x1ba   : > { %v882_v18 = vpop.f32.mrf.mxu1 }
 0x1bb   : > { %v980_v19 = vpack.c.bf16 %v975_v17, %v975_v17  ;;  %v892_v20 = vadd.f32 %v882_v18, %v817_v14  ;;  %v959_v21 = vpop.f32.mrf.mxu2 }
 0x1bc   : > { %v2733_v22 = vld [vmem:[#allocation3] sm:$0xff]   ;;  %v2390_v21 = vld [vmem:[%s2890_s2 + $0xf0] sm:$0xff] }
 0x1bd   : > { %985 = vst.msk [vmem:[#allocation3 + $0x8] sm:$0xf] %vm305_vm3, %v980_v19  ;;  %v964_v23 = vadd.f32 %v954_v0, %v892_v20  ;;  %2128 = vmatmul.msk.bf16.vlgmr.msra.gmra.mxu0 %vm380_vm1, %v2733_v22  ;;  %v1014_v30 = vshll.u32 %v2733_v22, 16  ;;  %v2422_v4 = vunpack.c.h.b16 %v2733_v22  ;;  %v1012_v46 = vshrl.u32 %v2733_v22, 16 }
 0x1bf   : > { %v971_v24 = vadd.f32 %v2703_v48, %v964_v23  ;;  %v1016_v44 = vrot.slane %v1014_v30, 1  ;;  %v1161_v45 = vpack.c.b16 %v2422_v4, %v1159_v42  ;;  %v1106_v30 = vpack.c.b16 %v2422_v4, %v1104_v26 }
 0x1c1   : > { %v976_v25 = vmax.f32 %v971_v24, 0.0  ;;  %v1017_v54 = vor.u32 %v1016_v44, %v1012_v46  ;;  %v1164_v52 = vshrl.u32 %v1161_v45, 16  ;;  %v1167_v59 = vshll.u32 %v1161_v45, 16 }
 0x1c2   : > { %v885_v27 = vpop.f32.mrf.mxu1 }
 0x1c3   : > { %v981_v29 = vpack.c.bf16 %v976_v25, %v976_v25  ;;  %v893_v32 = vadd.f32 %v885_v27, %v2692_v37  ;;  %v1166_v49 = vrot.slane %v1164_v52, 3  ;;  %v1169_v56 = vrot.slane %v1167_v59, 4  ;;  %v2438_v25 = vld [vmem:[#allocation3 + $0x4] sm:$0x8] }
 0x1c4   : > { %v1219_v33 = vld [vmem:[#allocation3 + $0x4] sm:$0xff]  }
 0x1c5   : > { %v2748_v34 = vld [vmem:[#allocation3 + $0x4] sm:$0xf0]  ;;  %986 = vst.msk [vmem:[#allocation3 + $0xc] sm:$0xf] %vm305_vm3, %v981_v29  ;;  %v965_v38 = vadd.f32 %v957_v10, %v893_v32  ;;  %2170 = vmatmul.msk.bf16.vlgmr.msrb.gmra.mxu2 %vm380_vm1, %v1219_v33  ;;  %v1281_v6 = vshll.u32 %v1219_v33, 16  ;;  %v1170_v11 = vor.u32 %v1169_v56, %v1166_v49  ;;  %v1279_v14 = vshrl.u32 %v1219_v33, 16 }
 0x1c6   : > { %v992_v35 = vld [vmem:[#allocation3 + $0x8] sm:$0x1]  ;;  %v2439_v32 = vor.u32 %v2438_v25, %v2748_v34  ;;  %v2398_v25 = vld [vmem:[%s2890_s2 + $0x128] sm:$0xff] }
 0x1c7   : > { %v1008_v40 = vunpack.c.l.b16 %v992_v35  ;;  %v972_v28 = vadd.f32 %v2703_v48, %v965_v38  ;;  %v1283_v12 = vrot.slane %v1281_v6, 1  ;;  %v1096_v20 = vld [vmem:[#allocation3 + $0x8] sm:$0x3]  ;;  %v1108_v38 = vrot.slane %v1106_v30, 1 }
 0x1c8   : > { %v1105_v23 = vunpack.c.l.b16 %v1096_v20  ;;  %v1391_v44 = vshrl.u32 %v2439_v32, 16 }
 0x1c9   : > { %v1010_v37 = vpack.c.b16 %v1008_v40, %v1008_v40  ;;  %v977_v36 = vmax.f32 %v972_v28, 0.0  ;;  %v1284_v15 = vor.u32 %v1283_v12, %v1279_v14  ;;  %v1394_v28 = vshll.u32 %v2439_v32, 16 }
 0x1ca   : > { %v887_v51 = vpop.f32.mrf.mxu1  ;;  %v1107_v27 = vpack.c.b16 %v1105_v23, %v1105_v23  ;;  %v1393_v45 = vrot.slane %v1391_v44, 3 }
 0x1cb   : > { %v1019_v43 = vshll.u32 %v1010_v37, 16  ;;  %v982_v53 = vpack.c.bf16 %v977_v36, %v977_v36  ;;  %v1023_v19 = vshrl.u32 %v1010_v37, 16  ;;  %v1396_v34 = vrot.slane %v1394_v28, 4  ;;  %v2405_v28 = vld [vmem:[%s2890_s2 + $0x160] sm:$0xff] }
 0x1cc   : > { %v1151_v57 = vld [vmem:[#allocation3 + $0x8] sm:$0xff]   ;;  %v1109_v33 = vrot.slane %v1107_v27, 1 }
 0x1cd   : > { %v1021_v48 = vrot.slane %v1019_v43, 1  ;;  %v1221_v60 = vld [vmem:[#allocation3 + $0xc] sm:$0x1]  ;;  %v988_v61 = vsel %vm2654_vm10, %v982_v53, %v987_v50  ;;  %2129 = vmatmul.msk.bf16.gmra.mxu0 %vm380_vm1, %v1010_v37  ;;  %v1160_v63 = vunpack.c.l.b16 %v1151_v57  ;;  %v1340_v24 = vunpack.c.h.b16 %v1151_v57 }
 0x1ce   : > { %v1232_v0 = vunpack.c.l.b16 %v1221_v60  ;;  %989 = vst [vmem:[#allocation3 + $0x10] sm:$0x1] %v988_v61  ;;  %v2394_v29 = vld [vmem:[#allocation3 + $0x8] sm:$0xff]  ;;  %v1110_v42 = vsel %vm467_vm4, %v1108_v38, %v1109_v33  ;;  %v1397_v36 = vor.u32 %v1396_v34, %v1393_v45  ;;  %v1343_v53 = vrot.slane %v2439_v32, 3  ;;  %v2408_v45 = vld [vmem:[%s2890_s2 + $0x178] sm:$0xff] }
 0x1cf   : > { %v1022_v62 = vsel %vm345_vm5, %v1017_v54, %v1021_v48  ;;  %v1162_v3 = vpack.c.b16 %v1160_v63, %v1160_v63  ;;  %v1342_v31 = vpack.c.b16 %v1340_v24, %v1340_v24  ;;  %v2406_v38 = vld [vmem:[%s2890_s2 + $0x168] sm:$0xff] }
 0x1d0   : > { %2118 = vmatmul.msk.bf16.vlgmr.msra.gmra.mxu3 %vm380_vm1, %v1022_v62  ;;  %v1234_v47 = vpack.c.b16 %v1232_v0, %v1232_v0  ;;  %1698 = vmatpush.bf16.msrb.mxu2 %v2406_v38 }
 0x1d1   : > { %1370 = vmatpush.bf16.msra.mxu3 %v2391_v2  ;;  %v1172_v58 = vshrl.u32 %v1162_v3, 16  ;;  %v1175_v5 = vshll.u32 %v1162_v3, 16  ;;  %v1399_v40 = vshrl.u32 %v1342_v31, 16  ;;  %v1402_v41 = vshll.u32 %v1342_v31, 16 }
 0x1d2   : > { %v1285_v10 = vshll.u32 %v1234_v47, 16  ;;  %v1289_v35 = vshrl.u32 %v1234_v47, 16  ;;  %v1344_v51 = vrot.slane %v1342_v31, 3  ;;  %v2397_v31 = vld [vmem:[%s2890_s2 + $0x120] sm:$0xff] }
 0x1d3   : > { %v1174_v8 = vrot.slane %v1172_v58, 3  ;;  %v1177_v9 = vrot.slane %v1175_v5, 4  ;;  %v1401_v22 = vrot.slane %v1399_v40, 3  ;;  %v1404_v4 = vrot.slane %v1402_v41, 4  ;;  %v2399_v40 = vld [vmem:[%s2890_s2 + $0x130] sm:$0xff]  ;;  %v2404_v41 = vld [vmem:[%s2890_s2 + $0x158] sm:$0xff] }
 0x1d4   : > { %v1287_v17 = vrot.slane %v1285_v10, 1  ;;  %v1345_v48 = vsel %vm764_vm6, %v1343_v53, %v1344_v51  ;;  %v2400_v10 = vld [vmem:[%s2890_s2 + $0x138] sm:$0xff]  ;;  %1699 = vmatpush.bf16.msrb.mxu2 %v2405_v28 }
 0x1d5   : > { %v1178_v7 = vor.u32 %v1177_v9, %v1174_v8  ;;  %2171 = vmatmul.msk.bf16.gmra.mxu2 %vm380_vm1, %v1234_v47  ;;  %1371 = vmatpush.bf16.msra.mxu3 %v2390_v21  ;;  %v1448_v37 = vld [vmem:[#allocation3 + $0x10] sm:$0x1]  ;;  %v1405_v39 = vor.u32 %v1404_v4, %v1401_v22 }
 0x1d6   : > { %v1288_v18 = vsel %vm345_vm5, %v1284_v15, %v1287_v17  ;;  %v1459_v46 = vunpack.c.l.b16 %v1448_v37  ;;  %1555 = vmatpush.bf16.msra.mxu0 %v2400_v10  ;;  %v2402_v37 = vld [vmem:[%s2890_s2 + $0x148] sm:$0xff] }
 0x1d7   : > { %v1179_v16 = vsel %vm535_vm7, %v1170_v11, %v1178_v7  ;;  %v1406_v43 = vsel %vm535_vm7, %v1397_v36, %v1405_v39  ;;  %v2407_v36 = vld [vmem:[%s2890_s2 + $0x170] sm:$0xff] }
 0x1d8   : > { %2156 = vmatmul.msk.bf16.vlgmr.msrb.gmra.mxu1 %vm380_vm1, %v1179_v16  ;;  %v1461_v50 = vpack.c.b16 %v1459_v46, %v1459_v46 }
 0x1d9   : > { %1663 = vmatpush.bf16.msrb.mxu1 %v2404_v41 }
 0x1da   : > { %1556 = vmatpush.bf16.msra.mxu0 %v2399_v40 }
 0x1dd   : > { %2184 = vmatmul.msk.bf16.vlgmr.msrb.gmra.mxu0 %vm380_vm1, %v1288_v18 }
 0x1de   : > { %1621 = vmatpush.bf16.msrb.mxu0 %v2402_v37 }
 0x1e0   : > { %2119 = vmatmul.msk.bf16.gmra.mxu3 %vm380_vm1, %v1023_v19 }
 0x1e5   : > { %2230 = vmatmul.msk.bf16.vlgmr.msra.gmra.mxu2 %vm380_vm1, %v2394_v29 }
 0x1e8   : > { %2157 = vmatmul.msk.bf16.gmra.mxu1 %vm380_vm1, %v1174_v8 }
 0x1ed   : > { %2185 = vmatmul.msk.bf16.gmra.mxu0 %vm380_vm1, %v1289_v35 }
 0x1f0   : > { %2142 = vmatmul.msk.bf16.vlgmr.msrb.gmra.mxu3 %vm380_vm1, %v1110_v42 }
 0x1f1   : > { %1583 = vmatpush.bf16.msrb.mxu3 %v2398_v25 }
 0x1f5   : > { %2231 = vmatmul.msk.bf16.gmra.mxu2 %vm380_vm1, %v1461_v50  ;;  %1584 = vmatpush.bf16.msrb.mxu3 %v2397_v31 }
 0x1f8   : > { %2212 = vmatmul.msk.bf16.vlgmr.msra.gmra.mxu1 %vm380_vm1, %v1406_v43  ;;  %v2401_v43 = vld [vmem:[%s2890_s2 + $0x140] sm:$0xff] }
 0x1f9   : > { %1622 = vmatpush.bf16.msrb.mxu0 %v2401_v43 }
 0x200   : > { %2143 = vmatmul.msk.bf16.gmra.mxu3 %vm380_vm1, %v1109_v33 }
 0x208   : > { %2213 = vmatmul.msk.bf16.gmra.mxu1 %vm380_vm1, %v1401_v22  ;;  %v2403_v22 = vld [vmem:[%s2890_s2 + $0x150] sm:$0xff] }
 0x209   : > { %1664 = vmatpush.bf16.msrb.mxu1 %v2403_v22 }
 0x210   : > { %2198 = vmatmul.msk.bf16.vlgmr.msra.gmra.mxu3 %vm380_vm1, %v1345_v48  ;;  %v2412_v48 = vld [vmem:[%s2890_s2 + $0x198] sm:$0xff] }
 0x211   : > { %1738 = vmatpush.bf16.msra.mxu3 %v2408_v45  ;;  %1815 = vmatpush.bf16.msra.mxu1 %v2412_v48 }
 0x215   : > { %1739 = vmatpush.bf16.msra.mxu3 %v2407_v36 }
 0x220   : > { %2199 = vmatmul.msk.bf16.gmra.mxu3 %vm380_vm1, %v1344_v51  ;;  %v2436_v51 = vld [vmem:[%s2891_s3 + $0x2] ss:$0 sm:$0xff] }
 0x23a   : > { %v1086_v54 = vpop.f32.mrf.mxu0 }
 0x242   : > { %v1088_v57 = vpop.f32.mrf.mxu0 }
 0x248   : > { %v1262_v59 = vpop.f32.mrf.mxu2 }
 0x24a   : > { %v1091_v52 = vpop.f32.mrf.mxu0 }
 0x250   : > { %v1264_v62 = vpop.f32.mrf.mxu2 }
 0x252   : > { %v1093_v61 = vpop.f32.mrf.mxu0 }
 0x253   : > { %v1052_v60 = vpop.f32.mrf.mxu3 }
 0x254   : > { %v1087_v11 = vadd.f32 %v1086_v54, %v1052_v60  ;;  %v2414_v54 = vld [vmem:[%s2890_s2 + $0x1a8] sm:$0xff]  ;;  %v2413_v60 = vld [vmem:[%s2890_s2 + $0x1a0] sm:$0xff] }
 0x255   : > { %v1207_v63 = vpop.f32.mrf.mxu1  ;;  %1850 = vmatpush.bf16.msra.mxu2 %v2414_v54 }
 0x258   : > { %v1267_v2 = vpop.f32.mrf.mxu2 }
 0x259   : > { %1851 = vmatpush.bf16.msra.mxu2 %v2413_v60 }
 0x25a   : > { %v1318_v1 = vpop.f32.mrf.mxu0 }
 0x25b   : > { %v1054_v0 = vpop.f32.mrf.mxu3 }
 0x25c   : > { %v1089_v19 = vadd.f32 %v1088_v57, %v1054_v0 }
 0x25d   : > { %v1209_v3 = vpop.f32.mrf.mxu1 }
 0x260   : > { %v1269_v56 = vpop.f32.mrf.mxu2 }
 0x262   : > { %v2798_v49 = vpop.f32.mrf.mxu0 }
 0x263   : > { %v1057_v47 = vpop.f32.mrf.mxu3 }
 0x264   : > { %v1092_v27 = vadd.f32 %v1091_v52, %v1057_v47 }
 0x265   : > { %v1212_v58 = vpop.f32.mrf.mxu1 }
 0x268   : > { %v1489_v8 = vpop.f32.mrf.mxu2 }
 0x26a   : > { %v2800_v6 = vpop.f32.mrf.mxu0 }
 0x26b   : > { %v1059_v5 = vpop.f32.mrf.mxu3 }
 0x26d   : > { %v1214_v9 = vpop.f32.mrf.mxu1 }
 0x270   : > { %v2805_v14 = vpop.f32.mrf.mxu2 }
 0x272   : > { %v1325_v16 = vpop.f32.mrf.mxu0 }
 0x273   : > { %v1138_v7 = vpop.f32.mrf.mxu3 }
 0x274   : > { %v1147_v12 = vadd.f32 %v1138_v7, %v1087_v11 }
 0x275   : > { %v1434_v15 = vpop.f32.mrf.mxu1 }
 0x276   : > { %v1216_v17 = vadd.f32 %v1207_v63, %v1147_v12 }
 0x278   : > { %v1271_v18 = vadd.f32 %v1262_v59, %v1216_v17  ;;  %v2807_v55 = vpop.f32.mrf.mxu2  ;;  %v2411_v59 = vld [vmem:[%s2890_s2 + $0x190] sm:$0xff] }
 0x279   : > { %1816 = vmatpush.bf16.msra.mxu1 %v2411_v59 }
 0x27a   : > { %v1327_v34 = vadd.f32 %v1318_v1, %v1271_v18 }
 0x27b   : > { %v1140_v20 = vpop.f32.mrf.mxu3 }
 0x27c   : > { %v1148_v21 = vadd.f32 %v1140_v20, %v1089_v19 }
 0x27d   : > { %v1436_v24 = vpop.f32.mrf.mxu1 }
 0x27e   : > { %v1217_v23 = vadd.f32 %v1209_v3, %v1148_v21  ;;  %v1514_v21 = vld [vmem:[#allocation4 + $0x8] sm:$0x1] }
 0x280   : > { %v1272_v26 = vadd.f32 %v1264_v62, %v1217_v23  ;;  %v1496_v33 = vpop.f32.mrf.mxu2 }
 0x282   : > { %v1328_v52 = vadd.f32 %v2798_v49, %v1272_v26  ;;  %v2409_v26 = vld [vmem:[%s2890_s2 + $0x180] sm:$0xff] }
 0x283   : > { %v1143_v29 = vpop.f32.mrf.mxu3 }
 0x284   : > { %v1149_v30 = vadd.f32 %v1143_v29, %v1092_v27 }
 0x285   : > { %v1439_v35 = vpop.f32.mrf.mxu1 }
 0x286   : > { %v1218_v32 = vadd.f32 %v1212_v58, %v1149_v30 }
 0x288   : > { %v1273_v42 = vadd.f32 %v1267_v2, %v1218_v32 }
 0x28a   : > { %v1329_v47 = vadd.f32 %v2800_v6, %v1273_v42  ;;  %v2410_v6 = vld [vmem:[%s2890_s2 + $0x188] sm:$0xff] }
 0x28b   : > { %v1145_v44 = vpop.f32.mrf.mxu3 }
 0x28d   : > { %v1441_v4 = vpop.f32.mrf.mxu1 }
 0x293   : > { %v1373_v39 = vpop.f32.mrf.mxu3 }
 0x294   : > { %v1382_v46 = vadd.f32 %v1373_v39, %v1327_v34 }
 0x296   : > { %v1443_v50 = vadd.f32 %v1434_v15, %v1382_v46 }
 0x298   : > { %v1498_v53 = vadd.f32 %v1489_v8, %v1443_v50 }
 0x29a   : > { %v1503_v57 = vadd.f32 %v2436_v51, %v1498_v53 }
 0x29b   : > { %v1375_v61 = vpop.f32.mrf.mxu3 }
 0x29c   : > { %v1506_v62 = vmax.f32 %v1503_v57, 0.0  ;;  %v1383_v63 = vadd.f32 %v1375_v61, %v1328_v52 }
 0x29e   : > { %v1509_v0 = vpack.c.bf16 %v1506_v62, %v1506_v62  ;;  %v1444_v1 = vadd.f32 %v1436_v24, %v1383_v63 }
 0x2a0   : > { %1512 = vst.msk [vmem:[#allocation4] sm:$0xf] %vm305_vm3, %v1509_v0  ;;  %v1499_v2 = vadd.f32 %v2805_v14, %v1444_v1 }
 0x2a2   : > { %v1504_v3 = vadd.f32 %v2436_v51, %v1499_v2 }
 0x2a3   : > { %v1378_v49 = vpop.f32.mrf.mxu3 }
 0x2a4   : > { %v1507_v56 = vmax.f32 %v1504_v3, 0.0  ;;  %v1384_v58 = vadd.f32 %v1378_v49, %v1329_v47  ;;  %v1858_v3 = vld [vmem:[%s2891_s3 + $0x3] sm:$0x1] }
 0x2a6   : > { %v1510_v5 = vpack.c.bf16 %v1507_v56, %v1507_v56  ;;  %v1445_v8 = vadd.f32 %v1439_v35, %v1384_v58 }
 0x2a7   : > { %v1517_v9 = vld [vmem:[#allocation4] sm:$0x1]  ;;  %v1629_v10 = vld [vmem:[#allocation4] sm:$0x8]  ;;  %v1590_v30 = vld [vmem:[#allocation4] sm:$0x2] }
 0x2a8   : > { %1513 = vst.msk [vmem:[#allocation4 + $0x4] sm:$0xf] %vm305_vm3, %v1510_v5  ;;  %v1500_v11 = vadd.f32 %v2807_v55, %v1445_v8  ;;  %v1529_v7 = vunpack.c.l.b16 %v1517_v9  ;;  %2257 = vmatmul.msk.bf16.vlgmr.msrb.gmra.mxu3 %vm380_vm1, %v1517_v9  ;;  %v1636_v12 = vunpack.c.l.b16 %v1629_v10  ;;  %v1597_v33 = vunpack.c.l.b16 %v1590_v30 }
 0x2aa   : > { %v1505_v16 = vadd.f32 %v2436_v51, %v1500_v11  ;;  %v1530_v17 = vpack.c.b16 %v1529_v7, %v1529_v7  ;;  %v1637_v14 = vpack.c.b16 %v1636_v12, %v1636_v12  ;;  %v1598_v40 = vpack.c.b16 %v1597_v33, %v1597_v33 }
 0x2ab   : > { %v1380_v15 = vpop.f32.mrf.mxu3 }
 0x2ac   : > { %v1508_v18 = vmax.f32 %v1505_v16, 0.0  ;;  %v1532_v19 = vshrl.u32 %v1530_v17, 16  ;;  %v1639_v20 = vshrl.u32 %v1637_v14, 16  ;;  %v1599_v42 = vrot.slane %v1598_v40, 1 }
 0x2ae   : > { %v1511_v23 = vpack.c.bf16 %v1508_v18, %v1508_v18  ;;  %2248 = vmatmul.msk.bf16.vlgmr.msra.gmra.mxu0 %vm380_vm1, %v1532_v19  ;;  %v1641_v55 = vrot.slane %v1639_v20, 3 }
 0x2af   : > { %v1671_v24 = vld [vmem:[#allocation4 + $0x4] sm:$0x1]  ;;  %1777 = vmatpush.bf16.msra.mxu0 %v2410_v6  ;;  %v1746_v25 = vld [vmem:[#allocation4 + $0x4] sm:$0x8] }
 0x2b0   : > { %v1515_v27 = vsel %vm2654_vm10, %v1511_v23, %v1514_v21  ;;  %2283 = vmatmul.msk.bf16.vlgmr.msrb.gmra.mxu1 %vm380_vm1, %v1641_v55  ;;  %2296 = vmatmul.msk.bf16.vlgmr.msrb.gmra.mxu2 %vm380_vm1, %v1671_v24  ;;  %v1712_v29 = vunpack.c.l.b16 %v1671_v24  ;;  %v1753_v32 = vunpack.c.l.b16 %v1746_v25 }
 0x2b1   : > { %1516 = vst [vmem:[#allocation4 + $0x8] sm:$0x1] %v1515_v27 }
 0x2b2   : > { %v1713_v31 = vpack.c.b16 %v1712_v29, %v1712_v29  ;;  %v1754_v38 = vpack.c.b16 %v1753_v32, %v1753_v32 }
 0x2b3   : > { %1778 = vmatpush.bf16.msra.mxu0 %v2409_v26 }
 0x2b4   : > { %v1715_v35 = vshrl.u32 %v1713_v31, 16  ;;  %v1791_v41 = vshrl.u32 %v1754_v38, 16  ;;  %v1755_v28 = vrot.slane %v1754_v38, 3 }
 0x2b6   : > { %v1793_v13 = vrot.slane %v1791_v41, 3 }
 0x2b8   : > { %2309 = vmatmul.msk.bf16.vlgmr.msra.gmra.mxu3 %vm380_vm1, %v1715_v35  ;;  %v1823_v44 = vld [vmem:[#allocation4 + $0x8] sm:$0x1] }
 0x2be   : > { %2270 = vmatmul.msk.bf16.vlgmr.msrb.gmra.mxu0 %vm380_vm1, %v1599_v42 }
 0x2c0   : > { %2335 = vmatmul.msk.bf16.vlgmr.msra.gmra.mxu1 %vm380_vm1, %v1793_v13  ;;  %2348 = vmatmul.msk.bf16.vlgmr.msra.gmra.mxu2 %vm380_vm1, %v1823_v44 }
 0x2ce   : > { %2322 = vmatmul.msk.bf16.vlgmr.msra.gmra.mxu0 %vm380_vm1, %v1755_v28 }
 0x32b   : > { %v1558_v22 = vpop.f32.mrf.mxu0  ;;  %v1586_v4 = vpop.f32.mrf.mxu3 }
 0x32c   : > { %v1587_v50 = vadd.f32 %v1586_v4, %v1558_v22 }
 0x32d   : > { %v1666_v37 = vpop.f32.mrf.mxu1 }
 0x333   : > { %v1560_v45 = vpop.f32.mrf.mxu0  ;;  %v1588_v34 = vpop.f32.mrf.mxu3 }
 0x334   : > { %v1701_v39 = vpop.f32.mrf.mxu2 }
 0x335   : > { %v1668_v46 = vpop.f32.mrf.mxu1 }
 0x33b   : > { %v1624_v36 = vpop.f32.mrf.mxu0  ;;  %v1741_v43 = vpop.f32.mrf.mxu3 }
 0x33c   : > { %v1703_v51 = vpop.f32.mrf.mxu2  ;;  %v1628_v48 = vadd.f32 %v1624_v36, %v1587_v50 }
 0x33d   : > { %v1818_v53 = vpop.f32.mrf.mxu1 }
 0x33e   : > { %v1670_v54 = vadd.f32 %v1666_v37, %v1628_v48 }
 0x340   : > { %v1705_v61 = vadd.f32 %v1701_v39, %v1670_v54 }
 0x342   : > { %v1745_v62 = vadd.f32 %v1741_v43, %v1705_v61 }
 0x343   : > { %v1626_v57 = vpop.f32.mrf.mxu0  ;;  %v1743_v52 = vpop.f32.mrf.mxu3 }
 0x344   : > { %v1853_v59 = vpop.f32.mrf.mxu2 }
 0x345   : > { %v1820_v60 = vpop.f32.mrf.mxu1 }
 0x34b   : > { %v1780_v63 = vpop.f32.mrf.mxu0 }
 0x34c   : > { %v1784_v0 = vadd.f32 %v1780_v63, %v1745_v62  ;;  %v1855_v1 = vpop.f32.mrf.mxu2 }
 0x34e   : > { %v1822_v2 = vadd.f32 %v1818_v53, %v1784_v0 }
 0x350   : > { %v1857_v47 = vadd.f32 %v1853_v59, %v1822_v2 }
 0x352   : > { %v1859_v49 = vadd.f32 %v1858_v3, %v1857_v47 }
 0x353   : > { %v1782_v56 = vpop.f32.mrf.mxu0 }
 0x354   : > { %v1860_v58 = vmax.f32 %v1859_v49, 0.0 }
 0x356   : > { %1862 = vst.msk [vmem:[%s2494_s25] sm:$0x1] %vm312_vm8, %v1860_v58 }
 0x357 PF: > { %s14_s15 = sadd.s32 1, %s2449_s15  }
 0x358   : > { %p11_p4 = scmp.ge.s32.totalorder %s14_s15, 4  }
 0x35a   :  { %13 = sbr.rel (!%p11_p4) target bundleno = 1 (0x1), region = 92 }

</bundles_post_ra>
